<compile_context>
chip_gen: v5e
topology: v5e:2x2
jax: 0.10.0
libtpu: 0.0.40
codegen_flags: <defaults>
</compile_context>

<pallas_src>
import jax
import jax.numpy as jnp
from jax.experimental import pallas as pl
from jax.experimental.pallas import tpu as pltpu

# ----------------------------- model sizes ---------------------------------
B = 2          # batch
V = 512        # vertices (synthetic, multiple of 128 -> lane-dense)
NJ = 22        # joints: pelvis/root + 21 body joints (pose_body = 21*3 = 63)
P = 189        # pose-feature dim: 21 joints * 9 (R - I)
P_PAD = 192    # padded contraction dim for the pose-blendshape matmul

# SMPL-H body kinematic tree (22 joints), parents[0] = -1 (root).
PARENTS = [-1, 0, 0, 0, 1, 2, 3, 4, 5, 6, 7, 8, 9, 9, 9, 12, 13, 14, 16, 17, 18, 19]


# ----------------------------- Pallas kernel --------------------------------
def lbs_kernel(pf_ref, A_ref, posedirs_ref, wT_ref, vt_ref, out_ref):
    """Whole-batch linear blend skinning (single grid step).

    pf_ref:       (B, P_PAD)     bf16 pose feature (R-I flattened, zero padded)
    A_ref:        (B, 12, NJ)    f32 rest-relative joint transforms; rows are the
                                 3x4 block in column-major order (k*3 + c), with
                                 the global translation folded into rows 9..11
    posedirs_ref: (P_PAD, 3*V)   bf16 pose blendshape basis, column c*V + v
    wT_ref:       (NJ, V)        f32 skinning weights (transposed)
    vt_ref:       (3, V)         f32 template vertices (transposed)
    out_ref:      (B, 3, V)      f32 skinned vertices in (coord, vertex) layout
    """
    # Pose blendshape offsets for all batches at once: bf16 x bf16 -> f32 [MXU].
    offs = jnp.dot(pf_ref[...], posedirs_ref[...],
                   preferred_element_type=jnp.float32)          # (B, 3V) f32

    wT = wT_ref[...]                                            # (NJ, V)
    vt = vt_ref[...]                                            # (3, V)

    for b in range(B):                                          # B=2 static unroll
        ob = offs[b:b + 1]                                      # (1, 3V)
        vpx = vt[0:1] + ob[:, 0 * V:1 * V]                      # (1, V)
        vpy = vt[1:2] + ob[:, 1 * V:2 * V]
        vpz = vt[2:3] + ob[:, 2 * V:3 * V]

        # Per-vertex blended 3x4 transform (column-major rows): (12,NJ)@(NJ,V) [MXU]
        T = jnp.dot(A_ref[b], wT, preferred_element_type=jnp.float32)  # (12, V)

        # out[c] = T[c]*x + T[3+c]*y + T[6+c]*z + T[9+c]   (trans already folded)
        out_ref[b] = T[0:3] * vpx + T[3:6] * vpy + T[6:9] * vpz + T[9:12]


def lbs_pallas(pf_bf16, A_k, posedirs_k, weights_T, vt_k):
    grid_spec = pltpu.PrefetchScalarGridSpec(
        num_scalar_prefetch=0,
        grid=(1,),
        in_specs=[
            pl.BlockSpec((B, P_PAD), lambda i: (0, 0)),
            pl.BlockSpec((B, 12, NJ), lambda i: (0, 0, 0)),
            pl.BlockSpec((P_PAD, 3 * V), lambda i: (0, 0)),
            pl.BlockSpec((NJ, V), lambda i: (0, 0)),
            pl.BlockSpec((3, V), lambda i: (0, 0)),
        ],
        out_specs=pl.BlockSpec((B, 3, V), lambda i: (0, 0, 0)),
    )
    return pl.pallas_call(
        lbs_kernel,
        out_shape=jax.ShapeDtypeStruct((B, 3, V), jnp.float32),
        grid_spec=grid_spec,
        compiler_params=pltpu.CompilerParams(dimension_semantics=("arbitrary",)),
    )(pf_bf16, A_k, posedirs_k, weights_T, vt_k)


# ----------------------------- JAX glue --------------------------------------
def rodrigues(aa):
    """Axis-angle (..., 3) -> rotation matrices (..., 3, 3) with a safe norm."""
    sq = jnp.sum(aa * aa, axis=-1, keepdims=True)
    angle = jnp.sqrt(jnp.maximum(sq, 1e-16))
    axis = aa / angle
    s = jnp.sin(angle)[..., None]
    c = jnp.cos(angle)[..., None]
    x, y, z = axis[..., 0], axis[..., 1], axis[..., 2]
    zero = jnp.zeros_like(x)
    K = jnp.stack([zero, -z, y, z, zero, -x, -y, x, zero], axis=-1)
    K = K.reshape(aa.shape[:-1] + (3, 3))
    I = jnp.eye(3, dtype=aa.dtype)
    return I + s * K + (1.0 - c) * jnp.matmul(K, K)


def forward_kinematics(Rmats, J_rest, parents):
    """Rmats (B,NJ,3,3), J_rest (NJ,3) -> global transforms G and rest-relative A."""
    bsz = Rmats.shape[0]
    rel = jnp.concatenate(
        [J_rest[:1], J_rest[1:] - J_rest[jnp.array(parents[1:])]], axis=0)  # (NJ,3)

    bottom = jnp.broadcast_to(
        jnp.array([0.0, 0.0, 0.0, 1.0], jnp.float32).reshape(1, 1, 4), (bsz, 1, 4))

    def to_hom(Rj, tj):                                   # Rj (B,3,3), tj (3,)
        t = jnp.broadcast_to(tj.reshape(1, 3, 1), (bsz, 3, 1))
        return jnp.concatenate([jnp.concatenate([Rj, t], axis=-1), bottom], axis=1)

    G = [to_hom(Rmats[:, 0], rel[0])]
    for j in range(1, NJ):
        G.append(jnp.matmul(G[parents[j]], to_hom(Rmats[:, j], rel[j])))
    G = jnp.stack(G, axis=1)                              # (B, NJ, 4, 4)

    # Remove rest pose: A[..., :, 3] -= G[..., :, :3] @ J_rest
    corr = jnp.einsum("bjmn,jn->bjm", G[..., :, :3], J_rest)   # (B, NJ, 4)
    A = G.at[..., 3].add(-corr)
    return G, A


def prepare_kernel_params(params):
    """One-time static relayout of the model parameters into kernel layout."""
    v_template = params["v_template"]                               # (V, 3)
    posedirs = params["posedirs"]                                   # (V, 3, P)
    J_regressor = params["J_regressor"]                             # (NJ, V)
    weights = params["weights"]                                     # (V, NJ)

    pd = jnp.transpose(posedirs, (2, 1, 0)).reshape(P, 3 * V)       # [p, c*V + v]
    posedirs_k = (jnp.zeros((P_PAD, 3 * V), jnp.bfloat16)
                  .at[:P].set(pd.astype(jnp.bfloat16)))             # bf16 MXU operand
    return {
        "posedirs_k": posedirs_k,                                   # (P_PAD, 3V) bf16
        "weights_T": weights.T,                                     # (NJ, V) f32
        "vt_k": v_template.T,                                       # (3, V)  f32
        "J_rest": J_regressor @ v_template,                         # (NJ, 3) f32
    }


def body_model_forward(kparams, pose_body, root_orient, trans):
    """Mirrors BodyModel.forward(body_params) -> returns {'v', 'Jtr'}."""
    bsz = pose_body.shape[0]
    full_pose = jnp.concatenate(
        [root_orient.reshape(bsz, 1, 3), pose_body.reshape(bsz, NJ - 1, 3)], axis=1)
    Rmats = rodrigues(full_pose)                                    # (B, NJ, 3, 3)

    # betas / dmpls default to zero in the original call, so v_shaped = v_template.
    pose_feat = (Rmats[:, 1:] - jnp.eye(3, dtype=jnp.float32)).reshape(bsz, P)
    pf_bf16 = (jnp.zeros((bsz, P_PAD), jnp.float32)
               .at[:, :P].set(pose_feat)).astype(jnp.bfloat16)      # (B, P_PAD) bf16

    G, A = forward_kinematics(Rmats, kparams["J_rest"], PARENTS)    # (B, NJ, 4, 4)

    # Fold the global translation into the translation column (weights are a
    # softmax, so sum_j w[v,j] == 1 and +trans survives blending exactly), then
    # flatten the 3x4 block column-major -> rows k*3 + c.
    A34 = A[:, :, :3, :]                                            # (B, NJ, 3, 4)
    A34 = A34.at[..., 3].add(trans[:, None, :])
    A_k = jnp.transpose(A34, (0, 3, 2, 1)).reshape(bsz, 12, NJ)     # (B, 12, NJ)

    verts_cv = lbs_pallas(pf_bf16, A_k, kparams["posedirs_k"],
                          kparams["weights_T"], kparams["vt_k"])    # (B, 3, V)
    verts = jnp.transpose(verts_cv, (0, 2, 1))                      # (B, V, 3)
    Jtr = G[:, :, :3, 3] + trans[:, None, :]                        # (B, NJ, 3)
    return {"v": verts, "Jtr": Jtr}, (pose_feat, A)


def reference_lbs(params, pose_feat, A, trans):
    """Pure-JAX reference for the skinning hot path (correctness check).

    Mirrors the kernel's bf16 MXU operands (pose feature / posedirs) exactly.
    """
    v_template, posedirs, weights = (
        params["v_template"], params["posedirs"], params["weights"])
    bsz = pose_feat.shape[0]
    offs = jnp.einsum("bp,vcp->bvc",
                      pose_feat.astype(jnp.bfloat16),
                      posedirs.astype(jnp.bfloat16),
                      preferred_element_type=jnp.float32)
    v_posed = v_template[None] + offs                               # (B, V, 3)
    T = jnp.einsum("vj,bjmn->bvmn", weights, A,
                   precision=jax.lax.Precision.HIGHEST)             # (B, V, 4, 4)
    vph = jnp.concatenate([v_posed, jnp.ones((bsz, V, 1), jnp.float32)], axis=-1)
    return jnp.einsum("bvmn,bvn->bvm", T, vph,
                      precision=jax.lax.Precision.HIGHEST)[..., :3] + trans[:, None, :]


def init_params(key):
    k1, k2, k3, k4 = jax.random.split(key, 4)
    v_template = jax.random.normal(k1, (V, 3), jnp.float32) * 0.5
    posedirs = jax.random.normal(k2, (V, 3, P), jnp.float32) * 0.01
    jr = jax.nn.softmax(jax.random.normal(k3, (NJ, V), jnp.float32), axis=-1)
    w = jax.nn.softmax(jax.random.normal(k4, (V, NJ), jnp.float32) * 2.0, axis=-1)
    return {"v_template": v_template, "posedirs": posedirs,
            "J_regressor": jr, "weights": w}


# ----------------------------- main -----------------------------------------
if __name__ == "__main__":
    key = jax.random.PRNGKey(0)
    kp, ka, kb, kc = jax.random.split(key, 4)

    params = init_params(kp)
    kparams = prepare_kernel_params(params)          # static relayouts: done once
    pose_body = jax.random.normal(ka, (B, 63), jnp.float32) * 0.3
    root_orient = jax.random.normal(kb, (B, 3), jnp.float32) * 0.3
    trans = jax.random.normal(kc, (B, 3), jnp.float32)

    fwd = jax.jit(body_model_forward)
    out, (pose_feat, A) = fwd(kparams, pose_body, root_orient, trans)
    verts = jax.block_until_ready(out["v"])
    jax.block_until_ready(out["Jtr"])

    verts_ref = reference_lbs(params, pose_feat, A, trans)
    assert verts.shape == (B, V, 3)
    assert jnp.allclose(verts, verts_ref, atol=2e-4, rtol=2e-4), (
        float(jnp.max(jnp.abs(verts - verts_ref))))

    print("KERNEL_OK")
</pallas_src>

<mosaic_0001>
module attributes {stable_mosaic.version = 11 : i64} {
  func.func @lbs_kernel(%arg0: i32, %arg1: memref<2x192xbf16, #tpu.memory_space<vmem>>, %arg2: memref<2x12x22xf32, #tpu.memory_space<vmem>>, %arg3: memref<192x1536xbf16, #tpu.memory_space<vmem>>, %arg4: memref<22x512xf32, #tpu.memory_space<vmem>>, %arg5: memref<3x512xf32, #tpu.memory_space<vmem>>, %arg6: memref<2x3x512xf32, #tpu.memory_space<vmem>>) attributes {dimension_semantics = [#tpu.dimension_semantics<arbitrary>], iteration_bounds = array<i64: 1>, scalar_prefetch = 0 : i64, scratch_operands = 0 : i64, tpu.core_type = #tpu.core_type<tc>, window_params = [{pipeline_mode = #tpu.pipeline_mode<synchronous>, transform_indices = @transform_0, window_bounds = array<i64: 2, 192>}, {pipeline_mode = #tpu.pipeline_mode<synchronous>, transform_indices = @transform_1, window_bounds = array<i64: 2, 12, 22>}, {pipeline_mode = #tpu.pipeline_mode<synchronous>, transform_indices = @transform_2, window_bounds = array<i64: 192, 1536>}, {pipeline_mode = #tpu.pipeline_mode<synchronous>, transform_indices = @transform_3, window_bounds = array<i64: 22, 512>}, {pipeline_mode = #tpu.pipeline_mode<synchronous>, transform_indices = @transform_4, window_bounds = array<i64: 3, 512>}, {pipeline_mode = #tpu.pipeline_mode<synchronous>, transform_indices = @transform_5, window_bounds = array<i64: 2, 3, 512>}]} {
    %c0 = arith.constant 0 : index
    %c0_0 = arith.constant 0 : index
    %0 = vector.load %arg1[%c0, %c0_0] : memref<2x192xbf16, #tpu.memory_space<vmem>>, vector<2x192xbf16>
    %c0_1 = arith.constant 0 : index
    %c0_2 = arith.constant 0 : index
    %1 = vector.load %arg3[%c0_1, %c0_2] : memref<192x1536xbf16, #tpu.memory_space<vmem>>, vector<192x1536xbf16>
    %cst = arith.constant dense<0.000000e+00> : vector<2x1536xf32>
    %2 = tpu.matmul %0, %1, %cst {dimension_numbers = #tpu.dot_dimension_numbers<[1], [0], [0], [1], [0, 0, 1, 1], [], []>} : vector<2x192xbf16>, vector<192x1536xbf16>, vector<2x1536xf32> -> vector<2x1536xf32>
    %c0_3 = arith.constant 0 : index
    %c0_4 = arith.constant 0 : index
    %3 = vector.load %arg4[%c0_3, %c0_4] : memref<22x512xf32, #tpu.memory_space<vmem>>, vector<22x512xf32>
    %c0_5 = arith.constant 0 : index
    %c0_6 = arith.constant 0 : index
    %4 = vector.load %arg5[%c0_5, %c0_6] : memref<3x512xf32, #tpu.memory_space<vmem>>, vector<3x512xf32>
    %5 = vector.extract_strided_slice %2 {offsets = [0, 0], sizes = [1, 1536], strides = [1, 1]} : vector<2x1536xf32> to vector<1x1536xf32>
    %6 = vector.extract_strided_slice %4 {offsets = [0, 0], sizes = [1, 512], strides = [1, 1]} : vector<3x512xf32> to vector<1x512xf32>
    %7 = vector.extract_strided_slice %5 {offsets = [0, 0], sizes = [1, 512], strides = [1, 1]} : vector<1x1536xf32> to vector<1x512xf32>
    %8 = arith.addf %6, %7 : vector<1x512xf32>
    %9 = vector.extract_strided_slice %4 {offsets = [1, 0], sizes = [1, 512], strides = [1, 1]} : vector<3x512xf32> to vector<1x512xf32>
    %10 = vector.extract_strided_slice %5 {offsets = [0, 512], sizes = [1, 512], strides = [1, 1]} : vector<1x1536xf32> to vector<1x512xf32>
    %11 = arith.addf %9, %10 : vector<1x512xf32>
    %12 = vector.extract_strided_slice %4 {offsets = [2, 0], sizes = [1, 512], strides = [1, 1]} : vector<3x512xf32> to vector<1x512xf32>
    %13 = vector.extract_strided_slice %5 {offsets = [0, 1024], sizes = [1, 512], strides = [1, 1]} : vector<1x1536xf32> to vector<1x512xf32>
    %14 = arith.addf %12, %13 : vector<1x512xf32>
    %c0_7 = arith.constant 0 : index
    %c0_8 = arith.constant 0 : index
    %c0_9 = arith.constant 0 : index
    %15 = vector.load %arg2[%c0_7, %c0_8, %c0_9] : memref<2x12x22xf32, #tpu.memory_space<vmem>>, vector<1x12x22xf32>
    %16 = vector.shape_cast %15 : vector<1x12x22xf32> to vector<12x22xf32>
    %cst_10 = arith.constant dense<0.000000e+00> : vector<12x512xf32>
    %17 = tpu.matmul %16, %3, %cst_10 {dimension_numbers = #tpu.dot_dimension_numbers<[1], [0], [0], [1], [0, 0, 1, 1], [], []>} : vector<12x22xf32>, vector<22x512xf32>, vector<12x512xf32> -> vector<12x512xf32>
    %18 = vector.extract_strided_slice %17 {offsets = [0, 0], sizes = [3, 512], strides = [1, 1]} : vector<12x512xf32> to vector<3x512xf32>
    %19 = vector.broadcast %8 : vector<1x512xf32> to vector<3x512xf32>
    %20 = arith.mulf %18, %19 : vector<3x512xf32>
    %21 = vector.extract_strided_slice %17 {offsets = [3, 0], sizes = [3, 512], strides = [1, 1]} : vector<12x512xf32> to vector<3x512xf32>
    %22 = vector.broadcast %11 : vector<1x512xf32> to vector<3x512xf32>
    %23 = arith.mulf %21, %22 : vector<3x512xf32>
    %24 = arith.addf %20, %23 : vector<3x512xf32>
    %25 = vector.extract_strided_slice %17 {offsets = [6, 0], sizes = [3, 512], strides = [1, 1]} : vector<12x512xf32> to vector<3x512xf32>
    %26 = vector.broadcast %14 : vector<1x512xf32> to vector<3x512xf32>
    %27 = arith.mulf %25, %26 : vector<3x512xf32>
    %28 = arith.addf %24, %27 : vector<3x512xf32>
    %29 = vector.extract_strided_slice %17 {offsets = [9, 0], sizes = [3, 512], strides = [1, 1]} : vector<12x512xf32> to vector<3x512xf32>
    %30 = arith.addf %28, %29 : vector<3x512xf32>
    %c0_11 = arith.constant 0 : index
    %c0_12 = arith.constant 0 : index
    %c0_13 = arith.constant 0 : index
    %31 = vector.load %arg6[%c0_11, %c0_12, %c0_13] : memref<2x3x512xf32, #tpu.memory_space<vmem>>, vector<1x3x512xf32>
    %32 = vector.shape_cast %31 : vector<1x3x512xf32> to vector<3x512xf32>
    %33 = vector.shape_cast %30 : vector<3x512xf32> to vector<1x3x512xf32>
    tpu.vector_store %arg6[%c0_11, %c0_12, %c0_13], %33 {strides = array<i32>} : memref<2x3x512xf32, #tpu.memory_space<vmem>>, vector<1x3x512xf32>,
    %34 = vector.extract_strided_slice %2 {offsets = [1, 0], sizes = [1, 1536], strides = [1, 1]} : vector<2x1536xf32> to vector<1x1536xf32>
    %35 = vector.extract_strided_slice %4 {offsets = [0, 0], sizes = [1, 512], strides = [1, 1]} : vector<3x512xf32> to vector<1x512xf32>
    %36 = vector.extract_strided_slice %34 {offsets = [0, 0], sizes = [1, 512], strides = [1, 1]} : vector<1x1536xf32> to vector<1x512xf32>
    %37 = arith.addf %35, %36 : vector<1x512xf32>
    %38 = vector.extract_strided_slice %4 {offsets = [1, 0], sizes = [1, 512], strides = [1, 1]} : vector<3x512xf32> to vector<1x512xf32>
    %39 = vector.extract_strided_slice %34 {offsets = [0, 512], sizes = [1, 512], strides = [1, 1]} : vector<1x1536xf32> to vector<1x512xf32>
    %40 = arith.addf %38, %39 : vector<1x512xf32>
    %41 = vector.extract_strided_slice %4 {offsets = [2, 0], sizes = [1, 512], strides = [1, 1]} : vector<3x512xf32> to vector<1x512xf32>
    %42 = vector.extract_strided_slice %34 {offsets = [0, 1024], sizes = [1, 512], strides = [1, 1]} : vector<1x1536xf32> to vector<1x512xf32>
    %43 = arith.addf %41, %42 : vector<1x512xf32>
    %c1 = arith.constant 1 : index
    %c0_14 = arith.constant 0 : index
    %c0_15 = arith.constant 0 : index
    %44 = vector.load %arg2[%c1, %c0_14, %c0_15] : memref<2x12x22xf32, #tpu.memory_space<vmem>>, vector<1x12x22xf32>
    %45 = vector.shape_cast %44 : vector<1x12x22xf32> to vector<12x22xf32>
    %cst_16 = arith.constant dense<0.000000e+00> : vector<12x512xf32>
    %46 = tpu.matmul %45, %3, %cst_16 {dimension_numbers = #tpu.dot_dimension_numbers<[1], [0], [0], [1], [0, 0, 1, 1], [], []>} : vector<12x22xf32>, vector<22x512xf32>, vector<12x512xf32> -> vector<12x512xf32>
    %47 = vector.extract_strided_slice %46 {offsets = [0, 0], sizes = [3, 512], strides = [1, 1]} : vector<12x512xf32> to vector<3x512xf32>
    %48 = vector.broadcast %37 : vector<1x512xf32> to vector<3x512xf32>
    %49 = arith.mulf %47, %48 : vector<3x512xf32>
    %50 = vector.extract_strided_slice %46 {offsets = [3, 0], sizes = [3, 512], strides = [1, 1]} : vector<12x512xf32> to vector<3x512xf32>
    %51 = vector.broadcast %40 : vector<1x512xf32> to vector<3x512xf32>
    %52 = arith.mulf %50, %51 : vector<3x512xf32>
    %53 = arith.addf %49, %52 : vector<3x512xf32>
    %54 = vector.extract_strided_slice %46 {offsets = [6, 0], sizes = [3, 512], strides = [1, 1]} : vector<12x512xf32> to vector<3x512xf32>
    %55 = vector.broadcast %43 : vector<1x512xf32> to vector<3x512xf32>
    %56 = arith.mulf %54, %55 : vector<3x512xf32>
    %57 = arith.addf %53, %56 : vector<3x512xf32>
    %58 = vector.extract_strided_slice %46 {offsets = [9, 0], sizes = [3, 512], strides = [1, 1]} : vector<12x512xf32> to vector<3x512xf32>
    %59 = arith.addf %57, %58 : vector<3x512xf32>
    %c1_17 = arith.constant 1 : index
    %c0_18 = arith.constant 0 : index
    %c0_19 = arith.constant 0 : index
    %60 = vector.load %arg6[%c1_17, %c0_18, %c0_19] : memref<2x3x512xf32, #tpu.memory_space<vmem>>, vector<1x3x512xf32>
    %61 = vector.shape_cast %60 : vector<1x3x512xf32> to vector<3x512xf32>
    %62 = vector.shape_cast %59 : vector<3x512xf32> to vector<1x3x512xf32>
    tpu.vector_store %arg6[%c1_17, %c0_18, %c0_19], %62 {strides = array<i32>} : memref<2x3x512xf32, #tpu.memory_space<vmem>>, vector<1x3x512xf32>,
    return
  }
  func.func @transform_0(%arg0: i32) -> (i32, i32) {
    %c0_i32 = arith.constant 0 : i32
    %c0_i32_0 = arith.constant 0 : i32
    %c0_i32_1 = arith.constant 0 : i32
    return %c0_i32, %c0_i32_0 : i32, i32
  }
  func.func @transform_1(%arg0: i32) -> (i32, i32, i32) {
    %c0_i32 = arith.constant 0 : i32
    %c0_i32_0 = arith.constant 0 : i32
    %c0_i32_1 = arith.constant 0 : i32
    %c0_i32_2 = arith.constant 0 : i32
    return %c0_i32, %c0_i32_0, %c0_i32_1 : i32, i32, i32
  }
  func.func @transform_2(%arg0: i32) -> (i32, i32) {
    %c0_i32 = arith.constant 0 : i32
    %c0_i32_0 = arith.constant 0 : i32
    %c0_i32_1 = arith.constant 0 : i32
    return %c0_i32, %c0_i32_0 : i32, i32
  }
  func.func @transform_3(%arg0: i32) -> (i32, i32) {
    %c0_i32 = arith.constant 0 : i32
    %c0_i32_0 = arith.constant 0 : i32
    %c0_i32_1 = arith.constant 0 : i32
    return %c0_i32, %c0_i32_0 : i32, i32
  }
  func.func @transform_4(%arg0: i32) -> (i32, i32) {
    %c0_i32 = arith.constant 0 : i32
    %c0_i32_0 = arith.constant 0 : i32
    %c0_i32_1 = arith.constant 0 : i32
    return %c0_i32, %c0_i32_0 : i32, i32
  }
  func.func @transform_5(%arg0: i32) -> (i32, i32, i32) {
    %c0_i32 = arith.constant 0 : i32
    %c0_i32_0 = arith.constant 0 : i32
    %c0_i32_1 = arith.constant 0 : i32
    %c0_i32_2 = arith.constant 0 : i32
    return %c0_i32, %c0_i32_0, %c0_i32_1 : i32, i32, i32
  }
}

</mosaic_0001>

<bundles_post_ra>
// kernel: sub.13
= control target key start
LH: loop header
LB: loop body
LE: loop exit
PB: predicated region body
PF: predicated region fallthrough
CT: control target
= control target key end

     0   :  { %s81_s0 = inlined_call_operand.vmem [shape: f32[21,3], index: 0, kind: input, shape index: {}]   ;;  %s82_s1 = inlined_call_operand.vmem [shape: f32[21,3], index: 1, kind: input, shape index: {}]   ;;  %s83_s2 = inlined_call_operand.vmem [shape: bf16[21,3], index: 2, kind: output, shape index: {}]  }
   0x1   :  { %v3_v0 = vld [vmem:[%s81_s0] sm:$0xff]  ;;  %v33_v2 = vld [vmem:[%s81_s0 + $0x8] sm:$0xff]  ;;  %v36_v5 = vld [vmem:[%s81_s0 + $0x10] sm:$0xff] }
   0x2   :  { %v4_v1 = vld [vmem:[%s82_s1] sm:$0xff]  ;;  %v34_v4 = vld [vmem:[%s82_s1 + $0x8] sm:$0xff]  ;;  %v37_v6 = vld [vmem:[%s82_s1 + $0x10] sm:$0xff] }
   0x3   :  { %v7_v3 = vsub.f32 %v3_v0, %v4_v1  ;;  %v17_v7 = vsub.f32 %v33_v2, %v34_v4  ;;  %v28_v8 = vsub.f32 %v36_v5, %v37_v6 }
   0x5   :  { %v9_v9 = vpack.c.bf16 0.0, %v7_v3  ;;  %v20_v10 = vpack.c.bf16 0.0, %v17_v7  ;;  %v31_v11 = vpack.c.bf16 0.0, %v28_v8 }
   0x7   :  { %10 = vst [vmem:[%s83_s2] sm:$0xf] %v9_v9 }
   0x8   :  { %35 = vst [vmem:[%s83_s2 + $0x4] sm:$0xf] %v20_v10 }
   0x9   :  { %38 = vst [vmem:[%s83_s2 + $0x8] sm:$0xf] %v31_v11 }

// kernel: body_model_forward.1
= control target key start
LH: loop header
LB: loop body
LE: loop exit
PB: predicated region body
PF: predicated region fallthrough
CT: control target
= control target key end

     0   :  { %vm891_vm0 = vcmask 523264   ;;  %vm1270_vm1 = vcmask 1045504   ;;  %vm1263_vm2 = vcmask 179200   ;;  %vm1226_vm3 = vcmask 1043456   ;;  %s3637_s2 = inlined_call_operand.vmem [shape: bf16[192,1536], index: 2, kind: input, shape index: {}]   ;;  %s3638_s0 = inlined_call_operand.vmem [shape: bf16[2,192], index: 0, kind: input, shape index: {}]   ;;  %s3639_s3 = inlined_call_operand.vmem [shape: f32[22,512], index: 3, kind: input, shape index: {}]   ;;  %s3640_s1 = inlined_call_operand.vmem [shape: f32[2,12,22], index: 1, kind: input, shape index: {}]   ;;  %s3641_s4 = inlined_call_operand.vmem [shape: f32[3,512], index: 4, kind: input, shape index: {}]   ;;  %s3642_s5 = inlined_call_operand.vmem [shape: f32[2,3,512], index: 5, kind: output, shape index: {}]  }
   0x1   :  { %v2098_v0 = vld [vmem:[%s3637_s2 + $0x2a0] sm:$0xf]  ;;  %v2468_v1 = vld [vmem:[%s3637_s2 + $0x2cc] sm:$0xf0]  ;;  %v2462_v5 = vld [vmem:[%s3637_s2 + $0x2a4] sm:$0xf] }
   0x2   :  { %v2290_v2 = vld [vmem:[%s3637_s2 + $0x420] sm:$0xf]  ;;  %v2099_v3 = vor.u32 %v2468_v1, %v2098_v0  ;;  %v2516_v4 = vld [vmem:[%s3637_s2 + $0x44c] sm:$0xf0]  ;;  %v2100_v6 = vld [vmem:[%s3637_s2 + $0x2d0] sm:$0xf0] }
   0x3   :  { %v2291_v7 = vor.u32 %v2516_v4, %v2290_v2  ;;  %v2103_v8 = vor.u32 %v2462_v5, %v2100_v6  ;;  %v2510_v9 = vld [vmem:[%s3637_s2 + $0x424] sm:$0xf]  ;;  %v2292_v10 = vld [vmem:[%s3637_s2 + $0x450] sm:$0xf0]  ;;  %v2050_v11 = vld [vmem:[%s3637_s2 + $0x240] sm:$0xf] }
   0x4   :  { %894 = vmatpush.bf16.msra.mxu0 %v2099_v3  ;;  %v2295_v12 = vor.u32 %v2510_v9, %v2292_v10  ;;  %v2456_v13 = vld [vmem:[%s3637_s2 + $0x26c] sm:$0xf0]  ;;  %v2242_v14 = vld [vmem:[%s3637_s2 + $0x3c0] sm:$0xf]  ;;  %v2450_v18 = vld [vmem:[%s3637_s2 + $0x244] sm:$0xf] }
   0x5   :  { %v2504_v15 = vld [vmem:[%s3637_s2 + $0x3ec] sm:$0xf0]  ;;  %911 = vmatpush.bf16.msra.mxu1 %v2291_v7  ;;  %920 = vmatpush.bf16.msra.mxu2 %v2103_v8  ;;  %v2051_v16 = vor.u32 %v2456_v13, %v2050_v11  ;;  %v2052_v19 = vld [vmem:[%s3637_s2 + $0x270] sm:$0xf0]  ;;  %v2498_v20 = vld [vmem:[%s3637_s2 + $0x3c4] sm:$0xf] }
   0x6   :  { %v2243_v17 = vor.u32 %v2504_v15, %v2242_v14  ;;  %937 = vmatpush.bf16.msra.mxu3 %v2295_v12  ;;  %v2055_v21 = vor.u32 %v2450_v18, %v2052_v19  ;;  %v2244_v22 = vld [vmem:[%s3637_s2 + $0x3f0] sm:$0xf0]  ;;  %v2002_v23 = vld [vmem:[%s3637_s2 + $0x1e0] sm:$0xf]  ;;  %v2444_v24 = vld [vmem:[%s3637_s2 + $0x20c] sm:$0xf0] }
   0x7   :  { %v2247_v25 = vor.u32 %v2498_v20, %v2244_v22  ;;  %v2194_v26 = vld [vmem:[%s3637_s2 + $0x360] sm:$0xf]  ;;  %v2492_v27 = vld [vmem:[%s3637_s2 + $0x38c] sm:$0xf0]  ;;  %v2438_v28 = vld [vmem:[%s3637_s2 + $0x1e4] sm:$0xf]  ;;  %v2003_v29 = vor.u32 %v2444_v24, %v2002_v23 }
   0x8   :  { %895 = vmatpush.bf16.msra.mxu0 %v2051_v16  ;;  %v2004_v30 = vld [vmem:[%s3637_s2 + $0x210] sm:$0xf0]  ;;  %v2486_v31 = vld [vmem:[%s3637_s2 + $0x364] sm:$0xf]  ;;  %v2195_v33 = vor.u32 %v2492_v27, %v2194_v26  ;;  %v1954_v35 = vld [vmem:[%s3637_s2 + $0x180] sm:$0xf] }
   0x9   :  { %v2196_v32 = vld [vmem:[%s3637_s2 + $0x390] sm:$0xf0]  ;;  %912 = vmatpush.bf16.msra.mxu1 %v2243_v17  ;;  %921 = vmatpush.bf16.msra.mxu2 %v2055_v21  ;;  %v2007_v34 = vor.u32 %v2438_v28, %v2004_v30  ;;  %v2432_v36 = vld [vmem:[%s3637_s2 + $0x1ac] sm:$0xf0]  ;;  %v2146_v37 = vld [vmem:[%s3637_s2 + $0x300] sm:$0xf] }
   0xa   :  { %938 = vmatpush.bf16.msra.mxu3 %v2247_v25  ;;  %v2199_v38 = vor.u32 %v2486_v31, %v2196_v32  ;;  %v2480_v39 = vld [vmem:[%s3637_s2 + $0x32c] sm:$0xf0]  ;;  %v2426_v40 = vld [vmem:[%s3637_s2 + $0x184] sm:$0xf]  ;;  %v1956_v41 = vld [vmem:[%s3637_s2 + $0x1b0] sm:$0xf0]  ;;  %v1955_v45 = vor.u32 %v2432_v36, %v1954_v35 }
   0xb   :  { %v2474_v42 = vld [vmem:[%s3637_s2 + $0x304] sm:$0xf]  ;;  %v2148_v43 = vld [vmem:[%s3637_s2 + $0x330] sm:$0xf0]  ;;  %v2106_v44 = vld [vmem:[%s3637_s2 + $0x2a8] sm:$0xf]  ;;  %v2147_v49 = vor.u32 %v2480_v39, %v2146_v37  ;;  %v1959_v50 = vor.u32 %v2426_v40, %v1956_v41 }
   0xc   :  { %896 = vmatpush.bf16.msra.mxu0 %v2003_v29  ;;  %v2469_v46 = vld [vmem:[%s3637_s2 + $0x2d4] sm:$0xf0]  ;;  %v2298_v47 = vld [vmem:[%s3637_s2 + $0x428] sm:$0xf]  ;;  %v1906_v51 = vld [vmem:[%s3637_s2 + $0x120] sm:$0xf]  ;;  %v2151_v53 = vor.u32 %v2474_v42, %v2148_v43 }
   0xd   :  { %v2517_v48 = vld [vmem:[%s3637_s2 + $0x454] sm:$0xf0]  ;;  %913 = vmatpush.bf16.msra.mxu1 %v2195_v33  ;;  %922 = vmatpush.bf16.msra.mxu2 %v2007_v34  ;;  %v2420_v52 = vld [vmem:[%s3637_s2 + $0x14c] sm:$0xf0]  ;;  %v2107_v54 = vor.u32 %v2469_v46, %v2106_v44  ;;  %v2414_v55 = vld [vmem:[%s3637_s2 + $0x124] sm:$0xf] }
   0xe   :  { %939 = vmatpush.bf16.msra.mxu3 %v2199_v38  ;;  %v1908_v56 = vld [vmem:[%s3637_s2 + $0x150] sm:$0xf0]  ;;  %v2299_v57 = vor.u32 %v2517_v48, %v2298_v47  ;;  %v2058_v58 = vld [vmem:[%s3637_s2 + $0x248] sm:$0xf]  ;;  %v2457_v59 = vld [vmem:[%s3637_s2 + $0x274] sm:$0xf0]  ;;  %v1907_v61 = vor.u32 %v2420_v52, %v1906_v51 }
   0xf   :  { %v21_v60 = vld [vmem:[%s3638_s0] sm:$0x3]  ;;  %v2250_v62 = vld [vmem:[%s3637_s2 + $0x3c8] sm:$0xf]  ;;  %v2505_v63 = vld [vmem:[%s3637_s2 + $0x3f4] sm:$0xf0]  ;;  %v1911_v0 = vor.u32 %v2414_v55, %v1908_v56  ;;  %v2059_v3 = vor.u32 %v2457_v59, %v2058_v58 }
  0x10   :  { %897 = vmatpush.bf16.msra.mxu0 %v1955_v45  ;;  %167 = vst [vmem:[#allocation1] ss:$9 sm:$0xff] %v21_v60  ;;  %v1858_v1 = vld [vmem:[%s3637_s2 + $0xc0] sm:$0xf]  ;;  %v2408_v2 = vld [vmem:[%s3637_s2 + $0xec] sm:$0xf0]  ;;  %v2251_v6 = vor.u32 %v2505_v63, %v2250_v62 }
  0x11   :  { %914 = vmatpush.bf16.msra.mxu1 %v2147_v49  ;;  %923 = vmatpush.bf16.msra.mxu2 %v1959_v50  ;;  %v2402_v4 = vld [vmem:[%s3637_s2 + $0xc4] sm:$0xf]  ;;  %v1860_v5 = vld [vmem:[%s3637_s2 + $0xf0] sm:$0xf0]  ;;  %v2010_v7 = vld [vmem:[%s3637_s2 + $0x1e8] sm:$0xf]  ;;  %v1859_v9 = vor.u32 %v2408_v2, %v1858_v1 }
  0x12   :  { %940 = vmatpush.bf16.msra.mxu3 %v2151_v53  ;;  %v2445_v8 = vld [vmem:[%s3637_s2 + $0x214] sm:$0xf0]  ;;  %v2202_v10 = vld [vmem:[%s3637_s2 + $0x368] sm:$0xf]  ;;  %v1863_v12 = vor.u32 %v2402_v4, %v1860_v5  ;;  %v1810_v13 = vld [vmem:[%s3637_s2 + $0x60] sm:$0xf] }
  0x13   :  { %v2493_v11 = vld [vmem:[%s3637_s2 + $0x394] sm:$0xf0]  ;;  %v2396_v14 = vld [vmem:[%s3637_s2 + $0x8c] sm:$0xf0]  ;;  %v2390_v15 = vld [vmem:[%s3637_s2 + $0x64] sm:$0xf]  ;;  %v2011_v16 = vor.u32 %v2445_v8, %v2010_v7 }
  0x14   :  { %898 = vmatpush.bf16.msra.mxu0 %v1907_v61  ;;  %v1812_v17 = vld [vmem:[%s3637_s2 + $0x90] sm:$0xf0]  ;;  %v1962_v18 = vld [vmem:[%s3637_s2 + $0x188] sm:$0xf]  ;;  %v2433_v19 = vld [vmem:[%s3637_s2 + $0x1b4] sm:$0xf0]  ;;  %v2203_v21 = vor.u32 %v2493_v11, %v2202_v10  ;;  %v1811_v24 = vor.u32 %v2396_v14, %v1810_v13 }
  0x15   :  { %946 = vmatpush.bf16.msrb.mxu1 %v2107_v54  ;;  %924 = vmatpush.bf16.msra.mxu2 %v1911_v0  ;;  %v2154_v22 = vld [vmem:[%s3637_s2 + $0x308] sm:$0xf]  ;;  %v2481_v23 = vld [vmem:[%s3637_s2 + $0x334] sm:$0xf0]  ;;  %v2114_v25 = vld [vmem:[%s3637_s2 + $0x2b0] sm:$0xf]  ;;  %v1815_v28 = vor.u32 %v2390_v15, %v1812_v17  ;;  %v1963_v32 = vor.u32 %v2433_v19, %v1962_v18 }
  0x16   :  { %963 = vmatpush.bf16.msrb.mxu3 %v2299_v57  ;;  %v2470_v26 = vld [vmem:[%s3637_s2 + $0x2dc] sm:$0xf0]  ;;  %v2384_v29 = vld [vmem:[%s3637_s2 + $0x2c] sm:$0xf0]  ;;  %v2378_v30 = vld [vmem:[%s3637_s2 + $0x4] sm:$0xf]  ;;  %v2155_v36 = vor.u32 %v2481_v23, %v2154_v22 }
  0x17   :  { %v2730_v20 = vld [vmem:[#allocation1 + $0x9] sm:$0xff]  ;;  %v1762_v27 = vld [vmem:[%s3637_s2] sm:$0xf]  ;;  %v1764_v31 = vld [vmem:[%s3637_s2 + $0x30] sm:$0xf0]  ;;  %v2115_v40 = vor.u32 %v2470_v26, %v2114_v25  ;;  %vm1457_vm4 = vcmask 1041408  }
  0x18   :  { %2337 = vmatmul.msk.bf16.vlgmr.msra.gmra.mxu3 %vm891_vm0, %v2730_v20  ;;  %899 = vmatpush.bf16.msra.mxu0 %v1859_v9  ;;  %v1914_v33 = vld [vmem:[%s3637_s2 + $0x128] sm:$0xf]  ;;  %v2463_v34 = vld [vmem:[%s3637_s2 + $0x2ac] sm:$0xf]  ;;  %v2108_v35 = vld [vmem:[%s3637_s2 + $0x2d8] sm:$0xf0]  ;;  %v1763_v41 = vor.u32 %v2384_v29, %v1762_v27  ;;  %v1767_v42 = vor.u32 %v2378_v30, %v1764_v31 }
  0x19   :  { %947 = vmatpush.bf16.msrb.mxu1 %v2059_v3  ;;  %925 = vmatpush.bf16.msra.mxu2 %v1863_v12  ;;  %v2421_v37 = vld [vmem:[%s3637_s2 + $0x154] sm:$0xf0]  ;;  %v2511_v38 = vld [vmem:[%s3637_s2 + $0x42c] sm:$0xf]  ;;  %v2300_v39 = vld [vmem:[%s3637_s2 + $0x458] sm:$0xf0]  ;;  %v2111_v43 = vor.u32 %v2463_v34, %v2108_v35 }
  0x1a   :  { %964 = vmatpush.bf16.msrb.mxu3 %v2251_v6  ;;  %2336 = vmatmul.msk.bf16.vlgmr.msra.gmra.mxu1 %vm891_vm0, %v2730_v20  ;;  %v2066_v44 = vld [vmem:[%s3637_s2 + $0x250] sm:$0xf]  ;;  %v2458_v45 = vld [vmem:[%s3637_s2 + $0x27c] sm:$0xf0]  ;;  %v1915_v46 = vor.u32 %v2421_v37, %v1914_v33  ;;  %v2303_v47 = vor.u32 %v2511_v38, %v2300_v39  ;;  %v1866_v48 = vld [vmem:[%s3637_s2 + $0xc8] sm:$0xf] }
  0x1b   :  { %v2451_v49 = vld [vmem:[%s3637_s2 + $0x24c] sm:$0xf]  ;;  %v2060_v50 = vld [vmem:[%s3637_s2 + $0x278] sm:$0xf0]  ;;  %v2409_v51 = vld [vmem:[%s3637_s2 + $0xf4] sm:$0xf0]  ;;  %v2067_v54 = vor.u32 %v2458_v45, %v2066_v44 }
  0x1c   :  { %900 = vmatpush.bf16.msra.mxu0 %v1811_v24  ;;  %v2499_v52 = vld [vmem:[%s3637_s2 + $0x3cc] sm:$0xf]  ;;  %v2252_v53 = vld [vmem:[%s3637_s2 + $0x3f8] sm:$0xf0]  ;;  %v2802_v55 = vld [vmem:[#allocation1] sm:$0xff]  ;;  %v2063_v56 = vor.u32 %v2451_v49, %v2060_v50  ;;  %v1867_v59 = vor.u32 %v2409_v51, %v1866_v48 }
  0x1d   :  { %948 = vmatpush.bf16.msrb.mxu1 %v2011_v16  ;;  %926 = vmatpush.bf16.msra.mxu2 %v1815_v28  ;;  %v2018_v57 = vld [vmem:[%s3637_s2 + $0x1f0] sm:$0xf]  ;;  %v2446_v58 = vld [vmem:[%s3637_s2 + $0x21c] sm:$0xf0]  ;;  %v2255_v60 = vor.u32 %v2499_v52, %v2252_v53  ;;  %v1818_v61 = vld [vmem:[%s3637_s2 + $0x68] sm:$0xf] }
  0x1e   :  { %965 = vmatpush.bf16.msrb.mxu3 %v2203_v21  ;;  %v2439_v62 = vld [vmem:[%s3637_s2 + $0x1ec] sm:$0xf]  ;;  %v2012_v63 = vld [vmem:[%s3637_s2 + $0x218] sm:$0xf0]  ;;  %v2397_v0 = vld [vmem:[%s3637_s2 + $0x94] sm:$0xf0]  ;;  %v2019_v3 = vor.u32 %v2446_v58, %v2018_v57 }
  0x1f   :  { %v2487_v1 = vld [vmem:[%s3637_s2 + $0x36c] sm:$0xf]  ;;  %v2204_v2 = vld [vmem:[%s3637_s2 + $0x398] sm:$0xf0]  ;;  %v2015_v4 = vor.u32 %v2439_v62, %v2012_v63  ;;  %v1970_v5 = vld [vmem:[%s3637_s2 + $0x190] sm:$0xf]  ;;  %v1819_v8 = vor.u32 %v2397_v0, %v1818_v61 }
  0x20   :  { %901 = vmatpush.bf16.msra.mxu0 %v1763_v41  ;;  %v2434_v6 = vld [vmem:[%s3637_s2 + $0x1bc] sm:$0xf0]  ;;  %v1770_v7 = vld [vmem:[%s3637_s2 + $0x8] sm:$0xf]  ;;  %v2207_v9 = vor.u32 %v2487_v1, %v2204_v2  ;;  %v2385_v10 = vld [vmem:[%s3637_s2 + $0x34] sm:$0xf0] }
  0x21   :  { %949 = vmatpush.bf16.msrb.mxu1 %v1963_v32  ;;  %927 = vmatpush.bf16.msra.mxu2 %v1767_v42  ;;  %v2427_v11 = vld [vmem:[%s3637_s2 + $0x18c] sm:$0xf]  ;;  %v1964_v12 = vld [vmem:[%s3637_s2 + $0x1b8] sm:$0xf0]  ;;  %v2306_v15 = vld [vmem:[%s3637_s2 + $0x430] sm:$0xf]  ;;  %v1971_v16 = vor.u32 %v2434_v6, %v1970_v5  ;;  %v1771_v24 = vor.u32 %v2385_v10, %v1770_v7 }
  0x22   :  { %966 = vmatpush.bf16.msrb.mxu3 %v2155_v36  ;;  %v2475_v13 = vld [vmem:[%s3637_s2 + $0x30c] sm:$0xf]  ;;  %v2156_v14 = vld [vmem:[%s3637_s2 + $0x338] sm:$0xf0]  ;;  %v2518_v17 = vld [vmem:[%s3637_s2 + $0x45c] sm:$0xf0]  ;;  %v1967_v21 = vor.u32 %v2427_v11, %v1964_v12 }
  0x23   :  { %902 = vmatmul.bf16.vlgmr.msra.gmra.mxu0 %v2802_v55  ;;  %v2464_v18 = vld [vmem:[%s3637_s2 + $0x2b4] sm:$0xf]  ;;  %v2116_v19 = vld [vmem:[%s3637_s2 + $0x2e0] sm:$0xf0]  ;;  %v1922_v22 = vld [vmem:[%s3637_s2 + $0x130] sm:$0xf]  ;;  %v2159_v25 = vor.u32 %v2475_v13, %v2156_v14  ;;  %v2307_v28 = vor.u32 %v2518_v17, %v2306_v15 }
  0x24   :  { %972 = vmatpush.bf16.msrb.mxu0 %v2111_v43  ;;  %928 = vmatmul.bf16.vlgmr.msra.gmra.mxu2 %v2802_v55  ;;  %v2422_v23 = vld [vmem:[%s3637_s2 + $0x15c] sm:$0xf0]  ;;  %v2415_v26 = vld [vmem:[%s3637_s2 + $0x12c] sm:$0xf]  ;;  %v1916_v27 = vld [vmem:[%s3637_s2 + $0x158] sm:$0xf0]  ;;  %v2119_v29 = vor.u32 %v2464_v18, %v2116_v19 }
  0x25   :  { %950 = vmatpush.bf16.msrb.mxu1 %v1915_v46  ;;  %989 = vmatpush.bf16.msrb.mxu2 %v2303_v47  ;;  %v2258_v30 = vld [vmem:[%s3637_s2 + $0x3d0] sm:$0xf]  ;;  %v1923_v31 = vor.u32 %v2422_v23, %v1922_v22  ;;  %v2506_v32 = vld [vmem:[%s3637_s2 + $0x3fc] sm:$0xf0]  ;;  %v2452_v33 = vld [vmem:[%s3637_s2 + $0x254] sm:$0xf]  ;;  %v1919_v35 = vor.u32 %v2415_v26, %v1916_v27 }
  0x26   :  { %998 = vmatpush.bf16.msra.mxu3 %v2115_v40  ;;  %v2068_v34 = vld [vmem:[%s3637_s2 + $0x280] sm:$0xf0]  ;;  %v1874_v36 = vld [vmem:[%s3637_s2 + $0xd0] sm:$0xf]  ;;  %v2410_v37 = vld [vmem:[%s3637_s2 + $0xfc] sm:$0xf0]  ;;  %v2259_v40 = vor.u32 %v2506_v32, %v2258_v30 }
  0x27   :  { %v2403_v38 = vld [vmem:[%s3637_s2 + $0xcc] sm:$0xf]  ;;  %v1868_v39 = vld [vmem:[%s3637_s2 + $0xf8] sm:$0xf0]  ;;  %v2071_v41 = vor.u32 %v2452_v33, %v2068_v34  ;;  %v2210_v42 = vld [vmem:[%s3637_s2 + $0x370] sm:$0xf]  ;;  %v1875_v43 = vor.u32 %v2410_v37, %v1874_v36 }
  0x28   :  { %973 = vmatpush.bf16.msrb.mxu0 %v2063_v56  ;;  %2338 = vmatmul.msk.bf16.vlgmr.msrb.gmra.mxu3 %vm891_vm0, %v2730_v20  ;;  %v2494_v44 = vld [vmem:[%s3637_s2 + $0x39c] sm:$0xf0]  ;;  %v2440_v45 = vld [vmem:[%s3637_s2 + $0x1f4] sm:$0xf]  ;;  %v2020_v46 = vld [vmem:[%s3637_s2 + $0x220] sm:$0xf0]  ;;  %v1871_v47 = vor.u32 %v2403_v38, %v1868_v39 }
  0x29   :  { %951 = vmatpush.bf16.msrb.mxu1 %v1867_v59  ;;  %990 = vmatpush.bf16.msrb.mxu2 %v2255_v60  ;;  %v1826_v48 = vld [vmem:[%s3637_s2 + $0x70] sm:$0xf]  ;;  %v2398_v49 = vld [vmem:[%s3637_s2 + $0x9c] sm:$0xf0]  ;;  %v2391_v50 = vld [vmem:[%s3637_s2 + $0x6c] sm:$0xf]  ;;  %v2211_v52 = vor.u32 %v2494_v44, %v2210_v42  ;;  %v2023_v53 = vor.u32 %v2440_v45, %v2020_v46 }
  0x2a   :  { %999 = vmatpush.bf16.msra.mxu3 %v2067_v54  ;;  %v1820_v51 = vld [vmem:[%s3637_s2 + $0x98] sm:$0xf0]  ;;  %v1778_v54 = vld [vmem:[%s3637_s2 + $0x10] sm:$0xf]  ;;  %v2386_v56 = vld [vmem:[%s3637_s2 + $0x3c] sm:$0xf0]  ;;  %v1827_v58 = vor.u32 %v2398_v49, %v1826_v48 }
  0x2b   :  { %v2162_v57 = vld [vmem:[%s3637_s2 + $0x310] sm:$0xf]  ;;  %v2482_v59 = vld [vmem:[%s3637_s2 + $0x33c] sm:$0xf0]  ;;  %v2428_v60 = vld [vmem:[%s3637_s2 + $0x194] sm:$0xf]  ;;  %v1823_v62 = vor.u32 %v2391_v50, %v1820_v51 }
  0x2c   :  { %974 = vmatpush.bf16.msrb.mxu0 %v2015_v4  ;;  %v1972_v61 = vld [vmem:[%s3637_s2 + $0x1c0] sm:$0xf0]  ;;  %v2122_v63 = vld [vmem:[%s3637_s2 + $0x2b8] sm:$0xf]  ;;  %v2471_v0 = vld [vmem:[%s3637_s2 + $0x2e4] sm:$0xf0]  ;;  %v2163_v5 = vor.u32 %v2482_v59, %v2162_v57 }
  0x2d   :  { %952 = vmatpush.bf16.msrb.mxu1 %v1819_v8  ;;  %991 = vmatpush.bf16.msrb.mxu2 %v2207_v9  ;;  %v2314_v1 = vld [vmem:[%s3637_s2 + $0x438] sm:$0xf]  ;;  %v2519_v2 = vld [vmem:[%s3637_s2 + $0x464] sm:$0xf0]  ;;  %v1772_v4 = vld [vmem:[%s3637_s2 + $0x38] sm:$0xf0]  ;;  %v1975_v6 = vor.u32 %v2428_v60, %v1972_v61  ;;  %v1779_v9 = vor.u32 %v2386_v56, %v1778_v54  ;;  %v2123_v10 = vor.u32 %v2471_v0, %v2122_v63 }
  0x2e   :  { %1000 = vmatpush.bf16.msra.mxu3 %v2019_v3  ;;  %v2379_v3 = vld [vmem:[%s3637_s2 + $0xc] sm:$0xf]  ;;  %v2512_v7 = vld [vmem:[%s3637_s2 + $0x434] sm:$0xf]  ;;  %v2308_v8 = vld [vmem:[%s3637_s2 + $0x460] sm:$0xf0]  ;;  %v2315_v13 = vor.u32 %v2519_v2, %v2314_v1 }
  0x2f   :  { %v2416_v11 = vld [vmem:[%s3637_s2 + $0x134] sm:$0xf]  ;;  %v1924_v12 = vld [vmem:[%s3637_s2 + $0x160] sm:$0xf0]  ;;  %v1775_v14 = vor.u32 %v2379_v3, %v1772_v4  ;;  %v2074_v15 = vld [vmem:[%s3637_s2 + $0x258] sm:$0xf]  ;;  %v2311_v17 = vor.u32 %v2512_v7, %v2308_v8 }
  0x30   :  { %975 = vmatpush.bf16.msrb.mxu0 %v1967_v21  ;;  %v2266_v18 = vld [vmem:[%s3637_s2 + $0x3d8] sm:$0xf]  ;;  %v2507_v19 = vld [vmem:[%s3637_s2 + $0x404] sm:$0xf0]  ;;  %v1927_v21 = vor.u32 %v2416_v11, %v1924_v12  ;;  %v2500_v22 = vld [vmem:[%s3637_s2 + $0x3d4] sm:$0xf] }
  0x31   :  { %953 = vmatpush.bf16.msrb.mxu1 %v1771_v24  ;;  %992 = vmatpush.bf16.msrb.mxu2 %v2159_v25  ;;  %v2260_v23 = vld [vmem:[%s3637_s2 + $0x400] sm:$0xf0]  ;;  %v2404_v25 = vld [vmem:[%s3637_s2 + $0xd4] sm:$0xf]  ;;  %v2267_v27 = vor.u32 %v2507_v19, %v2266_v18  ;;  %v2495_v32 = vld [vmem:[%s3637_s2 + $0x3a4] sm:$0xf0] }
  0x32   :  { %1001 = vmatpush.bf16.msra.mxu3 %v1971_v16  ;;  %v2459_v16 = vld [vmem:[%s3637_s2 + $0x284] sm:$0xf0]  ;;  %v1876_v26 = vld [vmem:[%s3637_s2 + $0x100] sm:$0xf0]  ;;  %v2263_v30 = vor.u32 %v2500_v22, %v2260_v23  ;;  %v2488_v34 = vld [vmem:[%s3637_s2 + $0x374] sm:$0xf] }
  0x33   :  { %v2075_v24 = vor.u32 %v2459_v16, %v2074_v15  ;;  %v1879_v33 = vor.u32 %v2404_v25, %v1876_v26  ;;  %v2392_v37 = vld [vmem:[%s3637_s2 + $0x74] sm:$0xf]  ;;  %v1828_v38 = vld [vmem:[%s3637_s2 + $0xa0] sm:$0xf0]  ;;  %v1978_v39 = vld [vmem:[%s3637_s2 + $0x198] sm:$0xf] }
  0x34   :  { %976 = vmatpush.bf16.msrb.mxu0 %v1919_v35  ;;  %954 = vmatmul.bf16.vlgmr.msrb.gmra.mxu1 %v2802_v55  ;;  %v2212_v35 = vld [vmem:[%s3637_s2 + $0x3a0] sm:$0xf0]  ;;  %v2170_v42 = vld [vmem:[%s3637_s2 + $0x318] sm:$0xf]  ;;  %v2130_v45 = vld [vmem:[%s3637_s2 + $0x2c0] sm:$0xf]  ;;  %v1831_v48 = vor.u32 %v2392_v37, %v1828_v38 }
  0x35   :  { %1015 = vmatpush.bf16.msra.mxu1 %v2307_v28  ;;  %1024 = vmatpush.bf16.msra.mxu2 %v2119_v29  ;;  %v2026_v28 = vld [vmem:[%s3637_s2 + $0x1f8] sm:$0xf]  ;;  %v2447_v29 = vld [vmem:[%s3637_s2 + $0x224] sm:$0xf0]  ;;  %v2215_v44 = vor.u32 %v2488_v34, %v2212_v35  ;;  %v2472_v46 = vld [vmem:[%s3637_s2 + $0x2ec] sm:$0xf0] }
  0x36   :  { %1002 = vmatpush.bf16.msra.mxu3 %v1923_v31  ;;  %2339 = vmatmul.msk.bf16.vlgmr.msrb.gmra.mxu2 %vm891_vm0, %v2730_v20  ;;  %v2218_v31 = vld [vmem:[%s3637_s2 + $0x378] sm:$0xf]  ;;  %v2027_v36 = vor.u32 %v2447_v29, %v2026_v28  ;;  %v1780_v49 = vld [vmem:[%s3637_s2 + $0x40] sm:$0xf0]  ;;  %v2476_v50 = vld [vmem:[%s3637_s2 + $0x314] sm:$0xf]  ;;  %v2131_v61 = vor.u32 %v2472_v46, %v2130_v45 }
  0x37   :  { %v2164_v51 = vld [vmem:[%s3637_s2 + $0x340] sm:$0xf0]  ;;  %v2465_v54 = vld [vmem:[%s3637_s2 + $0x2bc] sm:$0xf]  ;;  %v2124_v56 = vld [vmem:[%s3637_s2 + $0x2e8] sm:$0xf0] }
  0x38   :  { %977 = vmatpush.bf16.msrb.mxu0 %v1871_v47  ;;  %v2380_v47 = vld [vmem:[%s3637_s2 + $0x14] sm:$0xf]  ;;  %v2513_v59 = vld [vmem:[%s3637_s2 + $0x43c] sm:$0xf]  ;;  %v2316_v60 = vld [vmem:[%s3637_s2 + $0x468] sm:$0xf0]  ;;  %v2127_v0 = vor.u32 %v2465_v54, %v2124_v56 }
  0x39   :  { %1016 = vmatpush.bf16.msra.mxu1 %v2259_v40  ;;  %1025 = vmatpush.bf16.msra.mxu2 %v2071_v41  ;;  %v2219_v40 = vor.u32 %v2495_v32, %v2218_v31  ;;  %v2435_v41 = vld [vmem:[%s3637_s2 + $0x1c4] sm:$0xf0]  ;;  %v1783_v63 = vor.u32 %v2380_v47, %v1780_v49  ;;  %v2082_v1 = vld [vmem:[%s3637_s2 + $0x260] sm:$0xf]  ;;  %v2460_v2 = vld [vmem:[%s3637_s2 + $0x28c] sm:$0xf0]  ;;  %v2319_v4 = vor.u32 %v2513_v59, %v2316_v60 }
  0x3a   :  { %1003 = vmatpush.bf16.msra.mxu3 %v1875_v43  ;;  %v2483_v43 = vld [vmem:[%s3637_s2 + $0x344] sm:$0xf0]  ;;  %v2076_v7 = vld [vmem:[%s3637_s2 + $0x288] sm:$0xf0]  ;;  %v2083_v11 = vor.u32 %v2460_v2, %v2082_v1  ;;  %v2441_v18 = vld [vmem:[%s3637_s2 + $0x1fc] sm:$0xf] }
  0x3b   :  { %v2171_v57 = vor.u32 %v2483_v43, %v2170_v42  ;;  %v2411_v8 = vld [vmem:[%s3637_s2 + $0x104] sm:$0xf0]  ;;  %v2028_v19 = vld [vmem:[%s3637_s2 + $0x228] sm:$0xf0]  ;;  %v2489_v22 = vld [vmem:[%s3637_s2 + $0x37c] sm:$0xf] }
  0x3c   :  { %978 = vmatpush.bf16.msrb.mxu0 %v1823_v62  ;;  %v2167_v62 = vor.u32 %v2476_v50, %v2164_v51  ;;  %v2220_v23 = vld [vmem:[%s3637_s2 + $0x3a8] sm:$0xf0]  ;;  %v2031_v25 = vor.u32 %v2441_v18, %v2028_v19  ;;  %v1986_v26 = vld [vmem:[%s3637_s2 + $0x1a0] sm:$0xf]  ;;  %v1786_v28 = vld [vmem:[%s3637_s2 + $0x18] sm:$0xf] }
  0x3d   :  { %1017 = vmatpush.bf16.msra.mxu1 %v2211_v52  ;;  %1026 = vmatpush.bf16.msra.mxu2 %v2023_v53  ;;  %v1979_v52 = vor.u32 %v2435_v41, %v1978_v39  ;;  %v1930_v53 = vld [vmem:[%s3637_s2 + $0x138] sm:$0xf]  ;;  %v2387_v31 = vld [vmem:[%s3637_s2 + $0x44] sm:$0xf0]  ;;  %v2429_v32 = vld [vmem:[%s3637_s2 + $0x19c] sm:$0xf] }
  0x3e   :  { %1004 = vmatpush.bf16.msra.mxu3 %v1827_v58  ;;  %v2423_v58 = vld [vmem:[%s3637_s2 + $0x164] sm:$0xf0]  ;;  %v2477_v34 = vld [vmem:[%s3637_s2 + $0x31c] sm:$0xf]  ;;  %v2172_v35 = vld [vmem:[%s3637_s2 + $0x348] sm:$0xf0] }
  0x3f   :  { %v1931_v3 = vor.u32 %v2423_v58, %v1930_v53  ;;  %v2520_v38 = vld [vmem:[%s3637_s2 + $0x46c] sm:$0xf0]  ;;  %v2466_v39 = vld [vmem:[%s3637_s2 + $0x2c4] sm:$0xf]  ;;  %v1938_v42 = vld [vmem:[%s3637_s2 + $0x140] sm:$0xf]  ;;  %v2175_v45 = vor.u32 %v2477_v34, %v2172_v35 }
  0x40   :  { %979 = vmatpush.bf16.msrb.mxu0 %v1775_v14  ;;  %v2448_v14 = vld [vmem:[%s3637_s2 + $0x22c] sm:$0xf0]  ;;  %v2417_v46 = vld [vmem:[%s3637_s2 + $0x13c] sm:$0xf]  ;;  %v1932_v47 = vld [vmem:[%s3637_s2 + $0x168] sm:$0xf0] }
  0x41   :  { %1018 = vmatpush.bf16.msra.mxu1 %v2163_v5  ;;  %1027 = vmatpush.bf16.msra.mxu2 %v1975_v6  ;;  %v1882_v5 = vld [vmem:[%s3637_s2 + $0xd8] sm:$0xf]  ;;  %v2453_v6 = vld [vmem:[%s3637_s2 + $0x25c] sm:$0xf]  ;;  %v2424_v43 = vld [vmem:[%s3637_s2 + $0x16c] sm:$0xf0]  ;;  %v1935_v56 = vor.u32 %v2417_v46, %v1932_v47 }
  0x42   :  { %1005 = vmatpush.bf16.msra.mxu3 %v1779_v9  ;;  %v2501_v9 = vld [vmem:[%s3637_s2 + $0x3dc] sm:$0xf]  ;;  %v2079_v12 = vor.u32 %v2453_v6, %v2076_v7  ;;  %v1883_v15 = vor.u32 %v2411_v8, %v1882_v5  ;;  %v2274_v50 = vld [vmem:[%s3637_s2 + $0x3e0] sm:$0xf]  ;;  %v1939_v51 = vor.u32 %v2424_v43, %v1938_v42  ;;  %v2454_v53 = vld [vmem:[%s3637_s2 + $0x264] sm:$0xf] }
  0x43   :  { %980 = vmatmul.bf16.vlgmr.msrb.gmra.mxu0 %v2802_v55  ;;  %v2084_v54 = vld [vmem:[%s3637_s2 + $0x290] sm:$0xf0]  ;;  %v2412_v58 = vld [vmem:[%s3637_s2 + $0x10c] sm:$0xf0]  ;;  %v2405_v59 = vld [vmem:[%s3637_s2 + $0xdc] sm:$0xf] }
  0x44   :  { %1041 = vmatpush.bf16.msra.mxu0 %v2311_v17  ;;  %2340 = vmatmul.msk.bf16.vlgmr.msra.gmra.mxu1 %vm891_vm0, %v2730_v20  ;;  %v1834_v17 = vld [vmem:[%s3637_s2 + $0x78] sm:$0xf]  ;;  %v1884_v60 = vld [vmem:[%s3637_s2 + $0x108] sm:$0xf0]  ;;  %v2496_v1 = vld [vmem:[%s3637_s2 + $0x3ac] sm:$0xf0] }
  0x45   :  { %1050 = vmatpush.bf16.msrb.mxu1 %v2123_v10  ;;  %1028 = vmatpush.bf16.msra.mxu2 %v1927_v21  ;;  %v2268_v10 = vld [vmem:[%s3637_s2 + $0x408] sm:$0xf0]  ;;  %v2399_v21 = vld [vmem:[%s3637_s2 + $0xa4] sm:$0xf0]  ;;  %v2442_v2 = vld [vmem:[%s3637_s2 + $0x204] sm:$0xf] }
  0x46   :  { %1067 = vmatpush.bf16.msrb.mxu3 %v2315_v13  ;;  %v2034_v13 = vld [vmem:[%s3637_s2 + $0x200] sm:$0xf]  ;;  %v2271_v16 = vor.u32 %v2501_v9, %v2268_v10  ;;  %v1835_v29 = vor.u32 %v2399_v21, %v1834_v17  ;;  %v2400_v6 = vld [vmem:[%s3637_s2 + $0xac] sm:$0xf0]  ;;  %v2393_v7 = vld [vmem:[%s3637_s2 + $0x7c] sm:$0xf] }
  0x47   :  { %1006 = vmatmul.bf16.vlgmr.msra.gmra.mxu3 %v2802_v55  ;;  %v1842_v5 = vld [vmem:[%s3637_s2 + $0x80] sm:$0xf]  ;;  %v1836_v8 = vld [vmem:[%s3637_s2 + $0xa8] sm:$0xf0]  ;;  %v1988_v17 = vld [vmem:[%s3637_s2 + $0x1d0] sm:$0xf0] }
  0x48   :  { %1042 = vmatpush.bf16.msra.mxu0 %v2263_v30  ;;  %v2223_v30 = vor.u32 %v2489_v22, %v2220_v23  ;;  %v1839_v18 = vor.u32 %v2393_v7, %v1836_v8  ;;  %v2138_v19 = vld [vmem:[%s3637_s2 + $0x2c8] sm:$0xf]  ;;  %v2473_v21 = vld [vmem:[%s3637_s2 + $0x2f4] sm:$0xf0]  ;;  %v2381_v22 = vld [vmem:[%s3637_s2 + $0x1c] sm:$0xf] }
  0x49   :  { %1051 = vmatpush.bf16.msrb.mxu1 %v2075_v24  ;;  %1029 = vmatpush.bf16.msra.mxu2 %v1879_v33  ;;  %v2035_v24 = vor.u32 %v2448_v14, %v2034_v13  ;;  %v1980_v33 = vld [vmem:[%s3637_s2 + $0x1c8] sm:$0xf0]  ;;  %v2178_v13 = vld [vmem:[%s3637_s2 + $0x320] sm:$0xf]  ;;  %v1843_v14 = vor.u32 %v2400_v6, %v1842_v5  ;;  %v2502_v42 = vld [vmem:[%s3637_s2 + $0x3e4] sm:$0xf] }
  0x4a   :  { %1068 = vmatpush.bf16.msrb.mxu3 %v2267_v27  ;;  %v2436_v27 = vld [vmem:[%s3637_s2 + $0x1cc] sm:$0xf0]  ;;  %v1983_v41 = vor.u32 %v2429_v32, %v1980_v33  ;;  %v1788_v23 = vld [vmem:[%s3637_s2 + $0x48] sm:$0xf0]  ;;  %v2418_v32 = vld [vmem:[%s3637_s2 + $0x144] sm:$0xf] }
  0x4b   :  { %v1987_v37 = vor.u32 %v2436_v27, %v1986_v26  ;;  %v1940_v33 = vld [vmem:[%s3637_s2 + $0x170] sm:$0xf0]  ;;  %v1791_v34 = vor.u32 %v2381_v22, %v1788_v23  ;;  %v2478_v5 = vld [vmem:[%s3637_s2 + $0x324] sm:$0xf]  ;;  %v1946_v8 = vld [vmem:[%s3637_s2 + $0x148] sm:$0xf] }
  0x4c   :  { %1043 = vmatpush.bf16.msra.mxu0 %v2215_v44  ;;  %v1787_v44 = vor.u32 %v2387_v31, %v1786_v28  ;;  %v2514_v28 = vld [vmem:[%s3637_s2 + $0x444] sm:$0xf]  ;;  %v2139_v31 = vor.u32 %v2473_v21, %v2138_v19  ;;  %v2276_v43 = vld [vmem:[%s3637_s2 + $0x410] sm:$0xf0]  ;;  %v1898_v22 = vld [vmem:[%s3637_s2 + $0xe8] sm:$0xf] }
  0x4d   :  { %1052 = vmatpush.bf16.msrb.mxu1 %v2027_v36  ;;  %1030 = vmatpush.bf16.msra.mxu2 %v1831_v48  ;;  %v2322_v36 = vld [vmem:[%s3637_s2 + $0x440] sm:$0xf]  ;;  %v1892_v46 = vld [vmem:[%s3637_s2 + $0x110] sm:$0xf0]  ;;  %v2455_v23 = vld [vmem:[%s3637_s2 + $0x26c] sm:$0xf] }
  0x4e   :  { %1069 = vmatpush.bf16.msrb.mxu3 %v2219_v40  ;;  %v2132_v40 = vld [vmem:[%s3637_s2 + $0x2f0] sm:$0xf0]  ;;  %v2323_v48 = vor.u32 %v2520_v38, %v2322_v36  ;;  %v2090_v36 = vld [vmem:[%s3637_s2 + $0x268] sm:$0xf] }
  0x4f   :  { %v2135_v49 = vor.u32 %v2466_v39, %v2132_v40  ;;  %v2282_v39 = vld [vmem:[%s3637_s2 + $0x3e8] sm:$0xf]  ;;  %v2509_v40 = vld [vmem:[%s3637_s2 + $0x414] sm:$0xf0]  ;;  %v2180_v6 = vld [vmem:[%s3637_s2 + $0x350] sm:$0xf0] }
  0x50   :  { %1044 = vmatpush.bf16.msra.mxu0 %v2167_v62  ;;  %v2087_v62 = vor.u32 %v2454_v53, %v2084_v54  ;;  %v2283_v47 = vor.u32 %v2509_v40, %v2282_v39  ;;  %v2490_v54 = vld [vmem:[%s3637_s2 + $0x384] sm:$0xf]  ;;  %v1217_v40 = vld [vmem:[%s3639_s3 + $0x58] sm:$0x3f] }
  0x51   :  { %1053 = vmatpush.bf16.msrb.mxu1 %v1979_v52  ;;  %1031 = vmatpush.bf16.msra.mxu2 %v1783_v63  ;;  %v2508_v52 = vld [vmem:[%s3637_s2 + $0x40c] sm:$0xf0]  ;;  %v2226_v63 = vld [vmem:[%s3637_s2 + $0x380] sm:$0xf] }
  0x52   :  { %1070 = vmatpush.bf16.msrb.mxu3 %v2171_v57  ;;  %v1890_v57 = vld [vmem:[%s3637_s2 + $0xe0] sm:$0xf]  ;;  %v2227_v9 = vor.u32 %v2496_v1, %v2226_v63  ;;  %v2485_v1 = vld [vmem:[%s3637_s2 + $0x354] sm:$0xf0] }
  0x53   :  { %2341 = vmatmul.msk.bf16.vlgmr.msra.gmra.mxu0 %vm891_vm0, %v2730_v20 }
  0x54   :  { %1076 = vmatpush.bf16.msrb.mxu0 %v2127_v0  ;;  %1032 = vmatmul.bf16.vlgmr.msra.gmra.mxu2 %v2802_v55  ;;  %v1891_v0 = vor.u32 %v2412_v58, %v1890_v57  ;;  %v2394_v58 = vld [vmem:[%s3637_s2 + $0x84] sm:$0xf] }
  0x55   :  { %1054 = vmatpush.bf16.msrb.mxu1 %v1931_v3  ;;  %1093 = vmatpush.bf16.msrb.mxu2 %v2319_v4  ;;  %v2036_v3 = vld [vmem:[%s3637_s2 + $0x230] sm:$0xf0]  ;;  %v1887_v4 = vor.u32 %v2405_v59, %v1884_v60 }
  0x56   :  { %1102 = vmatpush.bf16.msra.mxu3 %v2131_v61  ;;  %v2275_v61 = vor.u32 %v2508_v52, %v2274_v50  ;;  %v2039_v10 = vor.u32 %v2442_v2, %v2036_v3  ;;  %v2279_v50 = vor.u32 %v2502_v42, %v2276_v43  ;;  %v2497_v52 = vld [vmem:[%s3637_s2 + $0x3b4] sm:$0xf0]  ;;  %v1844_v59 = vld [vmem:[%s3637_s2 + $0xb0] sm:$0xf0]  ;;  %v2382_v2 = vld [vmem:[%s3637_s2 + $0x24] sm:$0xf] }
  0x57   :  { %2342 = vmatmul.msk.bf16.vlgmr.msrb.gmra.mxu3 %vm891_vm0, %v2730_v20  ;;  %v1847_v3 = vor.u32 %v2394_v58, %v1844_v59  ;;  %v1802_v43 = vld [vmem:[%s3637_s2 + $0x28] sm:$0xf]  ;;  %v2407_v59 = vld [vmem:[%s3637_s2 + $0xec] sm:$0xf] }
  0x58   :  { %1077 = vmatpush.bf16.msrb.mxu0 %v2079_v12  ;;  %v2388_v12 = vld [vmem:[%s3637_s2 + $0x4c] sm:$0xf0] }
  0x59   :  { %1055 = vmatpush.bf16.msrb.mxu1 %v1883_v15  ;;  %1094 = vmatpush.bf16.msrb.mxu2 %v2271_v16  ;;  %v2484_v15 = vld [vmem:[%s3637_s2 + $0x34c] sm:$0xf0]  ;;  %v2430_v16 = vld [vmem:[%s3637_s2 + $0x1a4] sm:$0xf] }
  0x5a   :  { %1103 = vmatpush.bf16.msra.mxu3 %v2083_v11  ;;  %v1794_v11 = vld [vmem:[%s3637_s2 + $0x20] sm:$0xf]  ;;  %v2179_v26 = vor.u32 %v2484_v15, %v2178_v13  ;;  %v1991_v27 = vor.u32 %v2430_v16, %v1988_v17  ;;  %v2515_v13 = vld [vmem:[%s3637_s2 + $0x44c] sm:$0xf]  ;;  %v2183_v15 = vor.u32 %v2478_v5, %v2180_v6 }
  0x5b   :  { %v2522_v5 = vld [vmem:[#allocation1 + $0x9] sm:$0xff] }
  0x5c   :  { %1078 = vmatpush.bf16.msrb.mxu0 %v2031_v25  ;;  %v2521_v25 = vld [vmem:[%s3637_s2 + $0x474] sm:$0xf0] }
  0x5d   :  { %1056 = vmatpush.bf16.msrb.mxu1 %v1835_v29  ;;  %1095 = vmatpush.bf16.msrb.mxu2 %v2223_v30  ;;  %v2324_v29 = vld [vmem:[%s3637_s2 + $0x470] sm:$0xf0]  ;;  %v1795_v30 = vor.u32 %v2388_v12, %v1794_v11  ;;  %v2425_v12 = vld [vmem:[%s3637_s2 + $0x174] sm:$0xf0] }
  0x5e   :  { %1104 = vmatpush.bf16.msra.mxu3 %v2035_v24  ;;  %v2330_v24 = vld [vmem:[%s3637_s2 + $0x448] sm:$0xf]  ;;  %v2327_v38 = vor.u32 %v2514_v28, %v2324_v29  ;;  %v1947_v19 = vor.u32 %v2425_v12, %v1946_v8  ;;  %v3401_v28 = vld [vmem:[%s3639_s3 + $0x20] sm:$0xff]  ;;  %v1804_v8 = vld [vmem:[%s3637_s2 + $0x58] sm:$0xf0] }
  0x5f   :  { %v2331_v35 = vor.u32 %v2521_v25, %v2330_v24  ;;  %v2092_v24 = vld [vmem:[%s3637_s2 + $0x298] sm:$0xf0]  ;;  %v2413_v25 = vld [vmem:[%s3637_s2 + $0x114] sm:$0xf0] }
  0x60   :  { %1079 = vmatpush.bf16.msrb.mxu0 %v1983_v41  ;;  %v1943_v41 = vor.u32 %v2418_v32, %v1940_v33  ;;  %v2095_v29 = vor.u32 %v2455_v23, %v2092_v24  ;;  %v1850_v32 = vld [vmem:[%s3637_s2 + $0x88] sm:$0xf]  ;;  %v2443_v33 = vld [vmem:[%s3637_s2 + $0x20c] sm:$0xf] }
  0x61   :  { %1057 = vmatpush.bf16.msrb.mxu1 %v1787_v44  ;;  %1096 = vmatpush.bf16.msrb.mxu2 %v2175_v45  ;;  %v2406_v45 = vld [vmem:[%s3637_s2 + $0xe4] sm:$0xf] }
  0x62   :  { %1105 = vmatpush.bf16.msra.mxu3 %v1987_v37  ;;  %v2461_v37 = vld [vmem:[%s3637_s2 + $0x294] sm:$0xf0]  ;;  %v1895_v53 = vor.u32 %v2406_v45, %v1892_v46  ;;  %v1996_v45 = vld [vmem:[%s3637_s2 + $0x1d8] sm:$0xf0] }
  0x63   :  { %v2091_v44 = vor.u32 %v2461_v37, %v2090_v36  ;;  %v2491_v36 = vld [vmem:[%s3637_s2 + $0x38c] sm:$0xf]  ;;  %v2236_v37 = vld [vmem:[%s3637_s2 + $0x3b8] sm:$0xf0]  ;;  %v2389_v46 = vld [vmem:[%s3637_s2 + $0x54] sm:$0xf0] }
  0x64   :  { %1080 = vmatpush.bf16.msrb.mxu0 %v1935_v56  ;;  %1058 = vmatmul.bf16.vlgmr.msrb.gmra.mxu1 %v2802_v55  ;;  %v2228_v56 = vld [vmem:[%s3637_s2 + $0x3b0] sm:$0xf0]  ;;  %v2239_v42 = vor.u32 %v2491_v36, %v2236_v37 }
  0x65   :  { %1119 = vmatpush.bf16.msra.mxu1 %v2323_v48  ;;  %1128 = vmatpush.bf16.msra.mxu2 %v2135_v49  ;;  %v2042_v48 = vld [vmem:[%s3637_s2 + $0x208] sm:$0xf]  ;;  %v2449_v49 = vld [vmem:[%s3637_s2 + $0x234] sm:$0xf0]  ;;  %v2231_v63 = vor.u32 %v2490_v54, %v2228_v56  ;;  %v1216_v56 = vld [vmem:[%s3639_s3 + $0x50] sm:$0x3f] }
  0x66   :  { %1106 = vmatpush.bf16.msra.mxu3 %v1939_v51  ;;  %2343 = vmatmul.msk.bf16.vlgmr.msrb.gmra.mxu2 %vm891_vm0, %v2730_v20  ;;  %v2234_v51 = vld [vmem:[%s3637_s2 + $0x388] sm:$0xf]  ;;  %v2043_v57 = vor.u32 %v2449_v49, %v2042_v48  ;;  %v2188_v48 = vld [vmem:[%s3637_s2 + $0x358] sm:$0xf0] }
  0x67   :  { %v2235_v60 = vor.u32 %v2497_v52, %v2234_v51  ;;  %v2419_v52 = vld [vmem:[%s3637_s2 + $0x14c] sm:$0xf]  ;;  %v1209_v54 = vld [vmem:[%s3639_s3 + $0x18] sm:$0xff] }
  0x68   :  { %1081 = vmatpush.bf16.msrb.mxu0 %v1887_v4  ;;  %v1796_v4 = vld [vmem:[%s3637_s2 + $0x50] sm:$0xf0] }
  0x69   :  { %1120 = vmatpush.bf16.msra.mxu1 %v2275_v61  ;;  %1129 = vmatpush.bf16.msra.mxu2 %v2087_v62  ;;  %v1994_v61 = vld [vmem:[%s3637_s2 + $0x1a8] sm:$0xf]  ;;  %v2437_v62 = vld [vmem:[%s3637_s2 + $0x1d4] sm:$0xf0]  ;;  %v1799_v16 = vor.u32 %v2382_v2, %v1796_v4  ;;  %v2395_v2 = vld [vmem:[%s3637_s2 + $0x8c] sm:$0xf] }
  0x6a   :  { %1107 = vmatpush.bf16.msra.mxu3 %v1891_v0  ;;  %v2186_v0 = vld [vmem:[%s3637_s2 + $0x328] sm:$0xf]  ;;  %v1995_v7 = vor.u32 %v2437_v62, %v1994_v61  ;;  %v1212_v61 = vld [vmem:[%s3639_s3 + $0x30] sm:$0xff] }
  0x6b   :  { %v2187_v11 = vor.u32 %v2485_v1, %v2186_v0  ;;  %v1211_v62 = vld [vmem:[%s3639_s3 + $0x28] sm:$0xff]  ;;  %v1261_v1 = vld [vmem:[%s3640_s1] sm:$0xff]  ;;  %v1208_v4 = vld [vmem:[%s3639_s3 + $0x10] sm:$0xff] }
  0x6c   :  { %1082 = vmatpush.bf16.msrb.mxu0 %v1839_v18  ;;  %v3376_v18 = vld [vmem:[%s3639_s3 + $0x40] sm:$0x3f]  ;;  %v1207_v0 = vld [vmem:[%s3639_s3 + $0x8] sm:$0xff] }
  0x6d   :  { %1121 = vmatpush.bf16.msra.mxu1 %v2227_v9  ;;  %1130 = vmatpush.bf16.msra.mxu2 %v2039_v10  ;;  %v2467_v9 = vld [vmem:[%s3637_s2 + $0x2cc] sm:$0xf]  ;;  %v2140_v10 = vld [vmem:[%s3637_s2 + $0x2f8] sm:$0xf0] }
  0x6e   :  { %1108 = vmatpush.bf16.msra.mxu3 %v1843_v14  ;;  %v2332_v14 = vld [vmem:[%s3637_s2 + $0x478] sm:$0xf0]  ;;  %v2143_v17 = vor.u32 %v2467_v9, %v2140_v10  ;;  %v1262_v10 = vld [vmem:[%s3640_s1 + $0x8] sm:$0xf] }
  0x6f   :  { %v2335_v21 = vor.u32 %v2515_v13, %v2332_v14 }
  0x70   :  { %1083 = vmatpush.bf16.msrb.mxu0 %v1791_v34  ;;  %v2044_v34 = vld [vmem:[%s3637_s2 + $0x238] sm:$0xf0] }
  0x71   :  { %1122 = vmatpush.bf16.msra.mxu1 %v2179_v26  ;;  %1131 = vmatpush.bf16.msra.mxu2 %v1991_v27  ;;  %v2503_v26 = vld [vmem:[%s3637_s2 + $0x3ec] sm:$0xf]  ;;  %v2284_v27 = vld [vmem:[%s3637_s2 + $0x418] sm:$0xf0]  ;;  %v2047_v39 = vor.u32 %v2443_v33, %v2044_v34 }
  0x72   :  { %1109 = vmatpush.bf16.msra.mxu3 %v1795_v30  ;;  %v1899_v30 = vor.u32 %v2413_v25, %v1898_v22 }
  0x73   :  { %1084 = vmatmul.bf16.vlgmr.msrb.gmra.mxu0 %v2802_v55 }
  0x74   :  { %1145 = vmatpush.bf16.msra.mxu0 %v2327_v38  ;;  %2344 = vmatmul.msk.bf16.vlgmr.msra.gmra.mxu1 %vm891_vm0, %v2730_v20  ;;  %v3426_v38 = vld [vmem:[%s3639_s3] sm:$0xff] }
  0x75   :  { %1154 = vmatpush.bf16.msrb.mxu1 %v2139_v31  ;;  %1110 = vmatmul.bf16.vlgmr.msra.gmra.mxu3 %v2802_v55  ;;  %v2287_v31 = vor.u32 %v2503_v26, %v2284_v27 }
  0x76   :  { %1171 = vmatpush.bf16.msrb.mxu3 %v2331_v35  ;;  %1132 = vmatpush.bf16.msra.mxu2 %v1943_v41  ;;  %v2401_v35 = vld [vmem:[%s3637_s2 + $0xb4] sm:$0xf0] }
  0x77   :  { %v1851_v41 = vor.u32 %v2401_v35, %v1850_v32 }
  0x78   :  { %1146 = vmatpush.bf16.msra.mxu0 %v2279_v50  ;;  %v1803_v50 = vor.u32 %v2389_v46, %v1802_v43 }
  0x79   :  { %1155 = vmatpush.bf16.msrb.mxu1 %v2091_v44  ;;  %v2431_v44 = vld [vmem:[%s3637_s2 + $0x1ac] sm:$0xf] }
  0x7a   :  { %1172 = vmatpush.bf16.msrb.mxu3 %v2283_v47  ;;  %1133 = vmatpush.bf16.msra.mxu2 %v1895_v53  ;;  %v2479_v47 = vld [vmem:[%s3637_s2 + $0x32c] sm:$0xf]  ;;  %v1999_v49 = vor.u32 %v2431_v44, %v1996_v45  ;;  %v1948_v53 = vld [vmem:[%s3637_s2 + $0x178] sm:$0xf0] }
  0x7b   :  { %v2191_v51 = vor.u32 %v2479_v47, %v2188_v48  ;;  %v1951_v58 = vor.u32 %v2419_v52, %v1948_v53 }
  0x7c   :  { %1147 = vmatpush.bf16.msra.mxu0 %v2231_v63 }
  0x7d   :  { %1156 = vmatpush.bf16.msrb.mxu1 %v2043_v57  ;;  %v1215_v57 = vld [vmem:[%s3639_s3 + $0x48] sm:$0x3f] }
  0x7e   :  { %1173 = vmatpush.bf16.msrb.mxu3 %v2235_v60  ;;  %1134 = vmatpush.bf16.msra.mxu2 %v1847_v3  ;;  %v1900_v60 = vld [vmem:[%s3637_s2 + $0x118] sm:$0xf0] }
  0x7f   :  { %v1903_v63 = vor.u32 %v2407_v59, %v1900_v60  ;;  %v1852_v3 = vld [vmem:[%s3637_s2 + $0xb8] sm:$0xf0] }
  0x80   :  { %1148 = vmatpush.bf16.msra.mxu0 %v2183_v15  ;;  %v1855_v6 = vor.u32 %v2395_v2, %v1852_v3 }
  0x81   :  { %1157 = vmatpush.bf16.msrb.mxu1 %v1995_v7  ;;  %v2383_v7 = vld [vmem:[%s3637_s2 + $0x2c] sm:$0xf] }
  0x82   :  { %1174 = vmatpush.bf16.msrb.mxu3 %v2187_v11  ;;  %1135 = vmatpush.bf16.msra.mxu2 %v1799_v16  ;;  %v1807_v9 = vor.u32 %v2383_v7, %v1804_v8 }
  0x83   :  { %2345 = vmatmul.msk.bf16.vlgmr.msra.gmra.mxu0 %vm891_vm0, %v2730_v20 }
  0x84   :  { %1180 = vmatpush.bf16.msrb.mxu0 %v2143_v17 }
  0x85   :  { %1158 = vmatpush.bf16.msrb.mxu1 %v1947_v19  ;;  %1136 = vmatmul.bf16.vlgmr.msra.gmra.mxu2 %v2802_v55 }
  0x86   :  { %2348 = vmatpush.msk.msra.mxu3 %vm1270_vm1, %v3376_v18  ;;  %1197 = vmatpush.bf16.msrb.mxu2 %v2335_v21  ;;  %v2363_v21 = vld [vmem:[%s3640_s1 + $0x18] sm:$0xf] }
  0x87   :  { %2346 = vmatmul.msk.bf16.vlgmr.msrb.gmra.mxu3 %vm891_vm0, %v2730_v20  ;;  %v1213_v20 = vld [vmem:[%s3639_s3 + $0x38] sm:$0xff] }
  0x88   :  { %1297 = vmatpush.msra.mxu3 %v3401_v28  ;;  %1181 = vmatpush.bf16.msrb.mxu0 %v2095_v29 }
  0x89   :  { %1159 = vmatpush.bf16.msrb.mxu1 %v1899_v30 }
  0x8a   :  { %1198 = vmatpush.bf16.msrb.mxu2 %v2287_v31  ;;  %1298 = vmatpush.msra.mxu3 %v3426_v38 }
  0x8c   :  { %2357 = vmatpush.msk.msrb.mxu3 %vm1270_vm1, %v1217_v40  ;;  %1182 = vmatpush.bf16.msrb.mxu0 %v2047_v39 }
  0x8d   :  { %1160 = vmatpush.bf16.msrb.mxu1 %v1851_v41 }
  0x8e   :  { %1199 = vmatpush.bf16.msrb.mxu2 %v2239_v42  ;;  %1366 = vmatpush.msrb.mxu3 %v1213_v20 }
  0x90   :  { %1183 = vmatpush.bf16.msrb.mxu0 %v1999_v49  ;;  %1367 = vmatpush.msrb.mxu3 %v1209_v54 }
  0x91   :  { %1161 = vmatpush.bf16.msrb.mxu1 %v1803_v50 }
  0x92   :  { %1200 = vmatpush.bf16.msrb.mxu2 %v2191_v51 }
  0x94   :  { %1162 = vmatmul.bf16.vlgmr.msrb.gmra.mxu1 %v2802_v55  ;;  %1184 = vmatpush.bf16.msrb.mxu0 %v1951_v58 }
  0x95   :  { %2351 = vmatpush.msk.msra.mxu1 %vm1270_vm1, %v1215_v57  ;;  %2347 = vmatmul.msk.bf16.vlgmr.msrb.gmra.mxu2 %vm891_vm0, %v2522_v5 }
  0x96   :  { %2354 = vmatpush.msk.msra.mxu2 %vm1270_vm1, %v1216_v56 }
  0x97   :  { %1320 = vmatpush.msra.mxu1 %v1211_v62  ;;  %2349 = vmatmul.msk.f32.vlgmr.msra.gmra.mxu3 %vm1263_vm2, %v1261_v1  ;;  %v916_v11 = vpop.f32.mrf.mxu1 }
  0x98   :  { %1343 = vmatpush.msra.mxu2 %v1212_v61  ;;  %1185 = vmatpush.bf16.msrb.mxu0 %v1903_v63 }
  0x99   :  { %1321 = vmatpush.msra.mxu1 %v1207_v0  ;;  %2373 = vmatpush.msk.msra.mxu3 %vm1270_vm1, %v1217_v40 }
  0x9a   :  { %1344 = vmatpush.msra.mxu2 %v1208_v4 }
  0x9b   :  { %2367 = vmatpush.msk.msrb.mxu1 %vm1270_vm1, %v1215_v57  ;;  %1616 = vmatpush.msra.mxu3 %v1213_v20  ;;  %v942_v12 = vpop.f32.mrf.mxu3 }
  0x9c   :  { %2370 = vmatpush.msk.msrb.mxu2 %vm1270_vm1, %v1216_v56  ;;  %1186 = vmatpush.bf16.msrb.mxu0 %v1855_v6  ;;  %v3553_v6 = vld [vmem:[%s3641_s4] sm:$0x77] }
  0x9d   :  { %1570 = vmatpush.msrb.mxu1 %v1211_v62  ;;  %1617 = vmatpush.msra.mxu3 %v1209_v54 }
  0x9e   :  { %1593 = vmatpush.msrb.mxu2 %v1212_v61 }
  0x9f   :  { %1571 = vmatpush.msrb.mxu1 %v1207_v0  ;;  %2350 = vmatmul.msk.f32.gmra.mxu3 %vm1263_vm2, %v1262_v10  ;;  %v918_v13 = vpop.f32.mrf.mxu1 }
  0xa0   :  { %1594 = vmatpush.msrb.mxu2 %v1208_v4  ;;  %1187 = vmatpush.bf16.msrb.mxu0 %v1807_v9  ;;  %v903_v14 = vpop.f32.mrf.mxu0 }
  0xa1   :  { %v917_v15 = vadd.f32 %v916_v11, %v903_v14 }
  0xa3   :  { %1188 = vmatmul.bf16.vlgmr.msrb.gmra.mxu0 %v2802_v55  ;;  %v2362_v55 = vld [vmem:[%s3640_s1 + $0x10] sm:$0xff]  ;;  %v944_v16 = vpop.f32.mrf.mxu3 }
  0xa4   :  { %2364 = vmatpush.msk.msra.mxu0 %vm1270_vm1, %v3376_v18  ;;  %2352 = vmatmul.msk.f32.vlgmr.msra.gmra.mxu1 %vm1263_vm2, %v1261_v1 }
  0xa5   :  { %2355 = vmatmul.msk.f32.vlgmr.msra.gmra.mxu2 %vm1263_vm2, %v1261_v1 }
  0xa6   :  { %1547 = vmatpush.msra.mxu0 %v3401_v28 }
  0xa7   :  { %2358 = vmatmul.msk.f32.vlgmr.msrb.gmra.mxu3 %vm1263_vm2, %v1261_v1  ;;  %v929_v17 = vpop.f32.mrf.mxu2 }
  0xa8   :  { %1548 = vmatpush.msra.mxu0 %v3426_v38  ;;  %v943_v18 = vadd.f32 %v942_v12, %v929_v17  ;;  %v905_v19 = vpop.f32.mrf.mxu0  ;;  %v3566_v17 = vld [vmem:[%s3641_s4 + $0x8] sm:$0x77] }
  0xaa   :  { %v1224_v22 = vrot.slane %v943_v18, 4 }
  0xab   :  { %v968_v24 = vpop.f32.mrf.mxu3 }
  0xac   :  { %2353 = vmatmul.msk.f32.gmra.mxu1 %vm1263_vm2, %v1262_v10  ;;  %v3540_v23 = vsel %vm1226_vm3, %v917_v15, %v1224_v22 }
  0xad   :  { %2356 = vmatmul.msk.f32.gmra.mxu2 %vm1263_vm2, %v1262_v10  ;;  %v2360_v12 = vrot.slane %v3540_v23, 9  ;;  %v1231_v14 = vadd.f32 %v3540_v23, %v3553_v6 }
  0xaf   :  { %2359 = vmatmul.msk.f32.gmra.mxu3 %vm1263_vm2, %v1262_v10  ;;  %v931_v26 = vpop.f32.mrf.mxu2  ;;  %v1512_v18 = vadd.f32 %v2360_v12, %v3553_v6  ;;  %v1377_v19 = vperm.slane %v1231_v14, 0 }
  0xb1   :  { %v955_v25 = vpop.f32.mrf.mxu1 }
  0xb2   :  { %v969_v27 = vadd.f32 %v968_v24, %v955_v25 }
  0xb3   :  { %2365 = vmatmul.msk.f32.vlgmr.msra.gmra.mxu0 %vm1263_vm2, %v2362_v55  ;;  %v970_v28 = vpop.f32.mrf.mxu3 }
  0xb4   :  { %2368 = vmatmul.msk.f32.vlgmr.msrb.gmra.mxu1 %vm1263_vm2, %v2362_v55  ;;  %v1378_v28 = vperm.slane %v1231_v14, 4 }
  0xb5   :  { %2371 = vmatmul.msk.f32.vlgmr.msrb.gmra.mxu2 %vm1263_vm2, %v2362_v55 }
  0xb7   :  { %2374 = vmatmul.msk.f32.vlgmr.msra.gmra.mxu3 %vm1263_vm2, %v2362_v55 }
  0xb9   :  { %v957_v29 = vpop.f32.mrf.mxu1  ;;  %v994_v30 = vpop.f32.mrf.mxu2 }
  0xba   :  { %v1627_v29 = vperm.slane %v1512_v18, 0 }
  0xbb   :  { %2366 = vmatmul.msk.f32.gmra.mxu0 %vm1263_vm2, %v2363_v21 }
  0xbc   :  { %2369 = vmatmul.msk.f32.gmra.mxu1 %vm1263_vm2, %v2363_v21 }
  0xbd   :  { %2372 = vmatmul.msk.f32.gmra.mxu2 %vm1263_vm2, %v2363_v21 }
  0xbf   :  { %2375 = vmatmul.msk.f32.gmra.mxu3 %vm1263_vm2, %v2363_v21 }
  0xc0   :  { %v981_v31 = vpop.f32.mrf.mxu0 }
  0xc1   :  { %v995_v32 = vadd.f32 %v994_v30, %v981_v31  ;;  %v1020_v33 = vpop.f32.mrf.mxu1  ;;  %v996_v34 = vpop.f32.mrf.mxu2  ;;  %v1385_v30 = vperm.slane %v1377_v19, 0 }
  0xc3   :  { %v1225_v35 = vrot.slane %v995_v32, 4 }
  0xc5   :  { %v3547_v36 = vsel %vm1226_vm3, %v969_v27, %v1225_v35 }
  0xc6   :  { %v1232_v24 = vadd.f32 %v3547_v36, %v3566_v17 }
  0xc8   :  { %v983_v39 = vpop.f32.mrf.mxu0 }
  0xc9   :  { %v1022_v40 = vpop.f32.mrf.mxu1 }
  0xca   :  { %v1007_v37 = vpop.f32.mrf.mxu3  ;;  %v1379_v40 = vperm.slane %v1232_v24, 0 }
  0xcb   :  { %v1021_v38 = vadd.f32 %v1020_v33, %v1007_v37  ;;  %v1628_v33 = vperm.slane %v1512_v18, 4  ;;  %v2361_v37 = vrot.slane %v3547_v36, 9 }
  0xd0   :  { %v1046_v42 = vpop.f32.mrf.mxu0 }
  0xd2   :  { %v1009_v41 = vpop.f32.mrf.mxu3 }
  0xd3   :  { %v1386_v41 = vperm.slane %v1378_v28, 0 }
  0xd7   :  { %v1033_v43 = vpop.f32.mrf.mxu2 }
  0xd8   :  { %v1048_v45 = vpop.f32.mrf.mxu0  ;;  %v1047_v58 = vadd.f32 %v1046_v42, %v1033_v43  ;;  %v3574_v42 = vperm.slane %v1627_v29, 0 }
  0xda   :  { %v1072_v44 = vpop.f32.mrf.mxu3  ;;  %v1237_v60 = vrot.slane %v1047_v58, 4 }
  0xdc   :  { %v1239_v63 = vsel %vm1226_vm3, %v1021_v38, %v1237_v60 }
  0xdd   :  { %v1241_v2 = vrot.slane %v1239_v63, 7  ;;  %v3577_v43 = vadd.f32 %v1239_v63, %v3553_v6 }
  0xdf   :  { %v1035_v48 = vpop.f32.mrf.mxu2  ;;  %v1245_v11 = vadd.f32 %v1241_v2, %v3553_v6  ;;  %v1645_v2 = vperm.slane %v3577_v43, 1 }
  0xe1   :  { %v1059_v46 = vpop.f32.mrf.mxu1  ;;  %v1395_v16 = vperm.slane %v1245_v11, 1  ;;  %v1396_v32 = vperm.slane %v1245_v11, 5 }
  0xe2   :  { %v1073_v47 = vadd.f32 %v1072_v44, %v1059_v46  ;;  %v1074_v20 = vpop.f32.mrf.mxu3 }
  0xe3   :  { %v1403_v26 = vperm.slane %v1395_v16, 1  ;;  %v1404_v46 = vperm.slane %v1396_v32, 1 }
  0xe9   :  { %v1061_v49 = vpop.f32.mrf.mxu1  ;;  %v1098_v50 = vpop.f32.mrf.mxu2 }
  0xf0   :  { %v1085_v51 = vpop.f32.mrf.mxu0 }
  0xf1   :  { %v1124_v52 = vpop.f32.mrf.mxu1  ;;  %v1100_v53 = vpop.f32.mrf.mxu2  ;;  %v1099_v8 = vadd.f32 %v1098_v50, %v1085_v51 }
  0xf2   :  { %v1387_v53 = vperm.slane %v1379_v40, 0 }
  0xf3   :  { %v1238_v15 = vrot.slane %v1099_v8, 4 }
  0xf5   :  { %v1240_v23 = vsel %vm1226_vm3, %v1073_v47, %v1238_v15  ;;  %v3579_v47 = vperm.slane %v1628_v33, 0  ;;  %v1646_v15 = vperm.slane %v3577_v43, 5 }
  0xf6   :  { %v1242_v34 = vrot.slane %v1240_v23, 7  ;;  %v3597_v19 = vadd.f32 %v1240_v23, %v3566_v17 }
  0xf8   :  { %v1111_v54 = vpop.f32.mrf.mxu3  ;;  %v1087_v56 = vpop.f32.mrf.mxu0  ;;  %v1246_v36 = vadd.f32 %v1242_v34, %v3566_v17 }
  0xf9   :  { %v1126_v57 = vpop.f32.mrf.mxu1  ;;  %v1125_v5 = vadd.f32 %v1124_v52, %v1111_v54  ;;  %v1380_v54 = vperm.slane %v1232_v24, 4  ;;  %v3583_v56 = vadd.f32 %v2361_v37, %v3566_v17 }
  0xfa   :  { %v1398_v8 = vperm.slane %v1246_v36, 5 }
  0xfb   :  { %v1388_v12 = vperm.slane %v1380_v54, 0  ;;  %v1629_v16 = vperm.slane %v3583_v56, 0  ;;  %v1630_v18 = vperm.slane %v3583_v56, 4 }
  0xfc   :  { %v1406_v28 = vperm.slane %v1398_v8, 1 }
 0x100   :  { %v1113_v59 = vpop.f32.mrf.mxu3  ;;  %v1150_v61 = vpop.f32.mrf.mxu0 }
 0x108   :  { %v1137_v62 = vpop.f32.mrf.mxu2  ;;  %v1152_v4 = vpop.f32.mrf.mxu0 }
 0x109   :  { %v1151_v0 = vadd.f32 %v1150_v61, %v1137_v62 }
 0x10a   :  { %v1176_v1 = vpop.f32.mrf.mxu3 }
 0x10b   :  { %v1251_v3 = vrot.slane %v1151_v0, 4 }
 0x10d   :  { %v3556_v9 = vsel %vm1226_vm3, %v1125_v5, %v1251_v3  ;;  %v1397_v5 = vperm.slane %v1246_v36, 1  ;;  %v1654_v36 = vperm.slane %v1646_v15, 1 }
 0x10e   :  { %v1255_v55 = vrot.slane %v3556_v9, 6  ;;  %v1518_v57 = vrot.slane %v3556_v9, 7 }
 0x10f   :  { %v1405_v24 = vperm.slane %v1397_v5, 1 }
 0x110   :  { %v1139_v10 = vpop.f32.mrf.mxu2  ;;  %v1259_v22 = vadd.f32 %v1255_v55, %v3553_v6 }
 0x111   :  { %v1163_v7 = vpop.f32.mrf.mxu1 }
 0x112   :  { %v1178_v13 = vpop.f32.mrf.mxu3  ;;  %v1429_v35 = vperm.slane %v1259_v22, 2  ;;  %v1430_v50 = vperm.slane %v1259_v22, 6  ;;  %v1177_v58 = vadd.f32 %v1176_v1, %v1163_v7 }
 0x113   :  { %v1522_v13 = vadd.f32 %v1518_v57, %v3553_v6  ;;  %v1648_v57 = vperm.slane %v3597_v19, 5 }
 0x114   :  { %v1437_v48 = vperm.slane %v1429_v35, 2  ;;  %v1438_v4 = vperm.slane %v1430_v50, 2 }
 0x115   :  { %v1679_v33 = vperm.slane %v1522_v13, 2  ;;  %v1680_v34 = vperm.slane %v1522_v13, 6 }
 0x117   :  { %v1688_v5 = vperm.slane %v1680_v34, 2 }
 0x118   :  { %v1202_v25 = vpop.f32.mrf.mxu2 }
 0x119   :  { %v1165_v21 = vpop.f32.mrf.mxu1 }
 0x11a   :  { %v1300_v27 = vpop.f32.mrf.mxu3 }
 0x11b   :  { %v1407_v31 = vmul.f32 %v1403_v26, %v1300_v27  ;;  %v1389_v38 = vmul.f32 %v1385_v30, %v1300_v27  ;;  %v1441_v59 = vmul.f32 %v1437_v48, %v1300_v27 }
 0x11d   :  { %v1415_v39 = vrot.slane %v1407_v31, 3  ;;  %v1458_v1 = vrot.slane %v1441_v59, 6 }
 0x11f   :  { %v1423_v44 = vadd.f32 %v1415_v39, %v1389_v38 }
 0x120   :  { %v1189_v45 = vpop.f32.mrf.mxu0  ;;  %v1204_v52 = vpop.f32.mrf.mxu2 }
 0x121   :  { %v1203_v20 = vadd.f32 %v1202_v25, %v1189_v45  ;;  %v1323_v49 = vpop.f32.mrf.mxu1  ;;  %v1653_v25 = vperm.slane %v1645_v2, 1 }
 0x122   :  { %v1408_v51 = vmul.f32 %v1404_v46, %v1323_v49  ;;  %v3586_v61 = vpop.f32.mrf.mxu3  ;;  %v1390_v62 = vmul.f32 %v1386_v41, %v1323_v49  ;;  %v1442_v7 = vmul.f32 %v1438_v4, %v1323_v49 }
 0x123   :  { %v1252_v60 = vrot.slane %v1203_v20, 4  ;;  %v1445_v0 = vmul.f32 %v1437_v48, %v3586_v61  ;;  %v1482_v52 = vrot.slane %v3586_v61, 1 }
 0x124   :  { %v1416_v63 = vrot.slane %v1408_v51, 3  ;;  %v1461_v30 = vrot.slane %v1442_v7, 6  ;;  %v1647_v51 = vperm.slane %v3597_v19, 1 }
 0x125   :  { %v1254_v3 = vsel %vm1226_vm3, %v1177_v58, %v1252_v60  ;;  %v1459_v9 = vrot.slane %v1445_v0, 6 }
 0x126   :  { %v1256_v10 = vrot.slane %v1254_v3, 6  ;;  %v1424_v11 = vadd.f32 %v1416_v63, %v1390_v62  ;;  %v1519_v35 = vrot.slane %v1254_v3, 7  ;;  %v1687_v63 = vperm.slane %v1679_v33, 2 }
 0x127   :  { %v1460_v21 = vsel %vm1457_vm4, %v1458_v1, %v1459_v9 }
 0x128   :  { %v1191_v14 = vpop.f32.mrf.mxu0  ;;  %v1260_v55 = vadd.f32 %v1256_v10, %v3566_v17  ;;  %v1346_v27 = vpop.f32.mrf.mxu2  ;;  %v1474_v37 = vadd.f32 %v1460_v21, %v1423_v44 }
 0x129   :  { %v1326_v22 = vpop.f32.mrf.mxu1  ;;  %v1409_v31 = vmul.f32 %v1405_v24, %v1346_v27  ;;  %v1391_v40 = vmul.f32 %v1387_v53, %v1346_v27  ;;  %v3605_v53 = vadd.f32 %v1519_v35, %v3566_v17 }
 0x12a   :  { %v1446_v26 = vmul.f32 %v1438_v4, %v1326_v22  ;;  %v1431_v6 = vperm.slane %v1260_v55, 2  ;;  %v1432_v29 = vperm.slane %v1260_v55, 6  ;;  %v1369_v32 = vpop.f32.mrf.mxu3  ;;  %v1483_v39 = vrot.slane %v1326_v22, 1 }
 0x12b   :  { %v1410_v23 = vmul.f32 %v1406_v28, %v1369_v32  ;;  %v1417_v41 = vrot.slane %v1409_v31, 3  ;;  %v1392_v46 = vmul.f32 %v1388_v12, %v1369_v32  ;;  %v1490_v0 = vadd.f32 %v1482_v52, %v1474_v37 }
 0x12c   :  { %v1462_v38 = vrot.slane %v1446_v26, 6  ;;  %v1439_v43 = vperm.slane %v1431_v6, 2  ;;  %v1440_v20 = vperm.slane %v1432_v29, 2  ;;  %v1681_v12 = vperm.slane %v3605_v53, 2 }
 0x12d   :  { %v1418_v48 = vrot.slane %v1410_v23, 3  ;;  %v1425_v50 = vadd.f32 %v1417_v41, %v1391_v40  ;;  %v1638_v26 = vperm.slane %v1630_v18, 0  ;;  %v1655_v29 = vperm.slane %v1647_v51, 1 }
 0x12e   :  { %v1463_v45 = vsel %vm1457_vm4, %v1461_v30, %v1462_v38  ;;  %v1443_v59 = vmul.f32 %v1439_v43, %v1346_v27  ;;  %v1444_v2 = vmul.f32 %v1440_v20, %v1369_v32  ;;  %v1656_v30 = vperm.slane %v1648_v57, 1 }
 0x12f   :  { %v1475_v49 = vadd.f32 %v1463_v45, %v1424_v11  ;;  %v1426_v54 = vadd.f32 %v1418_v48, %v1392_v46  ;;  %v1689_v35 = vperm.slane %v1681_v12, 2 }
 0x130   :  { %v1550_v44 = vpop.f32.mrf.mxu0  ;;  %v1349_v4 = vpop.f32.mrf.mxu2  ;;  %v1464_v14 = vrot.slane %v1443_v59, 6  ;;  %v1467_v19 = vrot.slane %v1444_v2, 6 }
 0x131   :  { %v1491_v58 = vadd.f32 %v1483_v39, %v1475_v49  ;;  %v1657_v60 = vmul.f32 %v1653_v25, %v1550_v44  ;;  %v1573_v62 = vpop.f32.mrf.mxu1  ;;  %v1639_v61 = vmul.f32 %v3574_v42, %v1550_v44  ;;  %v1447_v11 = vmul.f32 %v1439_v43, %v1349_v4 }
 0x132   :  { %v1658_v3 = vmul.f32 %v1654_v36, %v1573_v62  ;;  %v1372_v9 = vpop.f32.mrf.mxu3  ;;  %v1640_v1 = vmul.f32 %v3579_v47, %v1573_v62  ;;  %v1691_v22 = vmul.f32 %v1687_v63, %v1550_v44  ;;  %v1692_v47 = vmul.f32 %v1688_v5, %v1573_v62 }
 0x133   :  { %v1498_v8 = vrot.slane %v1491_v58, 4  ;;  %v1665_v10 = vrot.slane %v1657_v60, 3  ;;  %v1448_v7 = vmul.f32 %v1440_v20, %v1372_v9  ;;  %v1465_v15 = vrot.slane %v1447_v11, 6 }
 0x134   :  { %v1666_v17 = vrot.slane %v1658_v3, 3  ;;  %v1637_v25 = vperm.slane %v1629_v16, 0  ;;  %v1485_v32 = vrot.slane %v1372_v9, 1  ;;  %v1484_v37 = vrot.slane %v1349_v4, 1 }
 0x135   :  { %v1500_v13 = vsel %vm1226_vm3, %v1490_v0, %v1498_v8  ;;  %v1673_v55 = vadd.f32 %v1665_v10, %v1639_v61  ;;  %v1468_v21 = vrot.slane %v1448_v7, 6  ;;  %v1466_v24 = vsel %vm1457_vm4, %v1464_v14, %v1465_v15 }
 0x136   :  { %1504 = vst [vmem:[%s3642_s5] sm:$0x77] %v1500_v13  ;;  %v1674_v42 = vadd.f32 %v1666_v17, %v1640_v1  ;;  %v1476_v27 = vadd.f32 %v1466_v24, %v1425_v50  ;;  %v1707_v38 = vrot.slane %v1691_v22, 6  ;;  %v1682_v16 = vperm.slane %v3605_v53, 6 }
 0x137   :  { %v1469_v6 = vsel %vm1457_vm4, %v1467_v19, %v1468_v21  ;;  %v1710_v18 = vrot.slane %v1692_v47, 6 }
 0x138   :  { %v1553_v28 = vpop.f32.mrf.mxu0  ;;  %v1477_v31 = vadd.f32 %v1469_v6, %v1426_v54  ;;  %v1596_v39 = vpop.f32.mrf.mxu2  ;;  %v1492_v45 = vadd.f32 %v1484_v37, %v1476_v27 }
 0x139   :  { %v1695_v33 = vmul.f32 %v1687_v63, %v1553_v28  ;;  %v1576_v34 = vpop.f32.mrf.mxu1  ;;  %v1659_v41 = vmul.f32 %v1655_v29, %v1596_v39  ;;  %v1641_v36 = vmul.f32 %v1637_v25, %v1596_v39  ;;  %v1731_v52 = vrot.slane %v1553_v28, 1 }
 0x13a   :  { %v1696_v23 = vmul.f32 %v1688_v5, %v1576_v34  ;;  %v1493_v40 = vadd.f32 %v1485_v32, %v1477_v31  ;;  %v1619_v43 = vpop.f32.mrf.mxu3  ;;  %v1732_v48 = vrot.slane %v1576_v34, 1  ;;  %v1690_v63 = vperm.slane %v1682_v16, 2 }
 0x13b   :  { %v1708_v56 = vrot.slane %v1695_v33, 6  ;;  %v1660_v20 = vmul.f32 %v1656_v30, %v1619_v43  ;;  %v1667_v51 = vrot.slane %v1659_v41, 3  ;;  %v1642_v44 = vmul.f32 %v1638_v26, %v1619_v43 }
 0x13c   :  { %v1711_v46 = vrot.slane %v1696_v23, 6  ;;  %v1499_v49 = vrot.slane %v1493_v40, 4  ;;  %v1693_v2 = vmul.f32 %v1689_v35, %v1596_v39  ;;  %v1694_v4 = vmul.f32 %v1690_v63, %v1619_v43 }
 0x13d   :  { %v1709_v50 = vsel %vm1457_vm4, %v1707_v38, %v1708_v56  ;;  %v1668_v57 = vrot.slane %v1660_v20, 3  ;;  %v1675_v60 = vadd.f32 %v1667_v51, %v1641_v36 }
 0x13e   :  { %v1712_v54 = vsel %vm1457_vm4, %v1710_v18, %v1711_v46  ;;  %v1501_v53 = vsel %vm1226_vm3, %v1492_v45, %v1499_v49  ;;  %v1723_v58 = vadd.f32 %v1709_v50, %v1673_v55  ;;  %v1713_v1 = vrot.slane %v1693_v2, 6 }
 0x13f   :  { %v1724_v59 = vadd.f32 %v1712_v54, %v1674_v42  ;;  %1505 = vst [vmem:[%s3642_s5 + $0x8] sm:$0x77] %v1501_v53  ;;  %v1676_v62 = vadd.f32 %v1668_v57, %v1642_v44  ;;  %v1716_v7 = vrot.slane %v1694_v4, 6 }
 0x140   :  { %v1599_v3 = vpop.f32.mrf.mxu2  ;;  %v1739_v5 = vadd.f32 %v1731_v52, %v1723_v58 }
 0x141   :  { %v1740_v0 = vadd.f32 %v1732_v48, %v1724_v59  ;;  %v1697_v61 = vmul.f32 %v1689_v35, %v1599_v3  ;;  %v1733_v42 = vrot.slane %v1599_v3, 1 }
 0x142   :  { %v1622_v10 = vpop.f32.mrf.mxu3 }
 0x143   :  { %v1747_v8 = vrot.slane %v1740_v0, 4  ;;  %v1698_v11 = vmul.f32 %v1690_v63, %v1622_v10  ;;  %v1714_v17 = vrot.slane %v1697_v61, 6  ;;  %v1734_v19 = vrot.slane %v1622_v10, 1 }
 0x145   :  { %v1749_v9 = vsel %vm1226_vm3, %v1739_v5, %v1747_v8  ;;  %v1717_v12 = vrot.slane %v1698_v11, 6  ;;  %v1715_v13 = vsel %vm1457_vm4, %v1713_v1, %v1714_v17 }
 0x146   :  { %2376 = vst [vmem:[%s3642_s5 + $0x10] sm:$0x77] %v1749_v9  ;;  %v1725_v55 = vadd.f32 %v1715_v13, %v1675_v60 }
 0x147   :  { %v1718_v14 = vsel %vm1457_vm4, %v1716_v7, %v1717_v12 }
 0x148   :  { %v1726_v15 = vadd.f32 %v1718_v14, %v1676_v62  ;;  %v1741_v22 = vadd.f32 %v1733_v42, %v1725_v55 }
 0x14a   :  { %v1742_v21 = vadd.f32 %v1734_v19, %v1726_v15 }
 0x14c   :  { %v1748_v24 = vrot.slane %v1742_v21, 4 }
 0x14e   :  { %v1750_v47 = vsel %vm1226_vm3, %v1741_v22, %v1748_v24 }
 0x14f   :  { %2377 = vst [vmem:[%s3642_s5 + $0x18] sm:$0x77] %v1750_v47 }

</bundles_post_ra>
